<compile_context>
chip_gen: v7x
topology: tpu7x:2x2x1
jax: 0.10.0
libtpu: 0.0.40
codegen_flags: <defaults>
</compile_context>

<pallas_src>
import math

import jax
import jax.numpy as jnp
from jax.experimental import pallas as pl
from jax.experimental.pallas import tpu as pltpu


def _mha_flash_kernel(q_ref, k_ref, v_ref,
                      wq_ref, bq_ref, wk_ref, bk_ref, wv_ref, bv_ref,
                      wo_ref, bo_ref,
                      out_ref,
                      q_sc, m_sc, l_sc, acc_sc):
    """One (batch, q-tile, kv-tile) grid step of fused multi-head attention.

    Ref shapes:
      q_ref             : (1, tq, D)
      k_ref, v_ref      : (1, tk, D)
      wq/wk/wv_ref      : (H, D, d_k)   per-head input-projection slabs
      bq/bk/bv_ref      : (H, 1, d_k)
      wo_ref            : (H, d_k, D)   per-head output-projection slabs
      bo_ref            : (1, D)
      out_ref           : (1, tq, D)
      q_sc              : (H, tq, d_k)  cached projected Q tile (compute dtype)
      m_sc, l_sc        : (H, tq, 1)    online-softmax running max / sum (f32)
      acc_sc            : (H, tq, d_k)  online-softmax output accumulator (f32)
    """
    ki = pl.program_id(2)
    num_heads, tq, d_k = acc_sc.shape
    tk = k_ref.shape[1]
    d_model = k_ref.shape[2]
    cdt = q_sc.dtype  # MXU operand dtype (bf16 on v6e/v7x, f32 on v5e / for checks)

    @pl.when(ki == 0)
    def _init():
        # Project this Q tile once per (batch, q-tile).  The 1/sqrt(d_k) scale is
        # already folded into wq/bq by the wrapper.
        q_b = jnp.broadcast_to(q_ref[0].astype(cdt), (num_heads, tq, d_model))
        qh = jnp.einsum('hsD,hDd->hsd', q_b, wq_ref[...].astype(cdt),
                        preferred_element_type=jnp.float32) + bq_ref[...]
        q_sc[...] = qh.astype(q_sc.dtype)
        m_sc[...] = jnp.full(m_sc.shape, -jnp.inf, dtype=m_sc.dtype)
        l_sc[...] = jnp.zeros(l_sc.shape, dtype=l_sc.dtype)
        acc_sc[...] = jnp.zeros(acc_sc.shape, dtype=acc_sc.dtype)

    # Project this K/V tile for all heads with single leading-batch contractions.
    # TODO(synk): for large S with many q-tiles, hoist K/V projections into a
    # separate pallas_call so each KV tile is projected once instead of per q-tile.
    k_b = jnp.broadcast_to(k_ref[0].astype(cdt), (num_heads, tk, d_model))
    v_b = jnp.broadcast_to(v_ref[0].astype(cdt), (num_heads, tk, d_model))
    kh = jnp.einsum('hsD,hDd->hsd', k_b, wk_ref[...].astype(cdt),
                    preferred_element_type=jnp.float32) + bk_ref[...]
    vh = jnp.einsum('hsD,hDd->hsd', v_b, wv_ref[...].astype(cdt),
                    preferred_element_type=jnp.float32) + bv_ref[...]

    # Scores for all heads at once, contracting the last axis of both operands
    # (no explicit K transpose).
    s = jnp.einsum('hqd,hkd->hqk', q_sc[...].astype(cdt), kh.astype(cdt),
                   preferred_element_type=jnp.float32)           # (H, tq, tk) f32

    # Online (flash) softmax update — elementwise math stays f32.
    m_prev = m_sc[...]
    m_new = jnp.maximum(m_prev, jnp.max(s, axis=-1, keepdims=True))
    alpha = jnp.exp(m_prev - m_new)
    p = jnp.exp(s - m_new)
    l_sc[...] = alpha * l_sc[...] + jnp.sum(p, axis=-1, keepdims=True)
    acc_sc[...] = alpha * acc_sc[...] + jnp.einsum(
        'hqk,hkd->hqd', p.astype(cdt), vh.astype(cdt),
        preferred_element_type=jnp.float32)
    m_sc[...] = m_new

    @pl.when(ki == pl.num_programs(2) - 1)
    def _finalize():
        # Normalize with an EUP reciprocal (multiply) instead of a VPU divide.
        inv_l = pl.reciprocal(l_sc[...], approx=True)
        o = acc_sc[...] * inv_l                                  # (H, tq, d_k) f32
        # Output projection accumulated per head slab — no concat / lane shuffle.
        contrib = jnp.einsum('hqd,hdD->hqD', o.astype(cdt), wo_ref[...].astype(cdt),
                             preferred_element_type=jnp.float32)
        out = jnp.sum(contrib, axis=0) + bo_ref[0]               # (tq, D)
        out_ref[0] = out.astype(out_ref.dtype)


def multi_head_attention(Q, K, V, params, *, num_heads,
                         q_block=128, kv_block=128,
                         compute_dtype=jnp.bfloat16):
    """params: dict with wq, bq, wk, bk, wv, bv, wo, bo.
    Weights in (in, out) layout; biases (D,).  compute_dtype is the MXU operand
    dtype (accumulation and softmax are always f32)."""
    B, Sq, D = Q.shape
    _, Skv, _ = K.shape
    assert V.shape == K.shape and K.shape[0] == B and K.shape[2] == D
    assert D % num_heads == 0
    d_k = D // num_heads
    out_dtype = Q.dtype

    tq = min(q_block, Sq)
    tk = min(kv_block, Skv)
    assert Sq % tq == 0 and Skv % tk == 0, "sequence lengths must divide tile sizes"
    n_q = Sq // tq
    n_kv = Skv // tk

    scale = 1.0 / math.sqrt(d_k)
    f32 = jnp.float32

    # Per-head weight slabs (one-time wrapper-side parameter transform in XLA).
    def in_proj_w(w):   # (D, D) -> (H, D, d_k)
        return jnp.transpose(w.reshape(D, num_heads, d_k), (1, 0, 2))

    def in_proj_b(b):   # (D,) -> (H, 1, d_k)
        return b.reshape(num_heads, 1, d_k)

    wq = in_proj_w(params["wq"].astype(f32) * scale).astype(compute_dtype)
    bq = in_proj_b(params["bq"].astype(f32) * scale)
    wk = in_proj_w(params["wk"].astype(f32)).astype(compute_dtype)
    bk = in_proj_b(params["bk"].astype(f32))
    wv = in_proj_w(params["wv"].astype(f32)).astype(compute_dtype)
    bv = in_proj_b(params["bv"].astype(f32))
    wo = params["wo"].astype(f32).reshape(num_heads, d_k, D).astype(compute_dtype)
    bo = params["bo"].astype(f32).reshape(1, D)

    # Cast activations to the MXU operand dtype up front (halves HBM/VMEM traffic
    # when bf16); softmax / accumulation stay f32 inside the kernel.
    Qc = Q.astype(compute_dtype)
    Kc = K.astype(compute_dtype)
    Vc = V.astype(compute_dtype)

    q_spec = pl.BlockSpec((1, tq, D), lambda b, qi, ki: (b, qi, 0))
    kv_spec = pl.BlockSpec((1, tk, D), lambda b, qi, ki: (b, ki, 0))
    out_spec = pl.BlockSpec((1, tq, D), lambda b, qi, ki: (b, qi, 0))
    w_in_spec = pl.BlockSpec((num_heads, D, d_k), lambda b, qi, ki: (0, 0, 0))
    b_in_spec = pl.BlockSpec((num_heads, 1, d_k), lambda b, qi, ki: (0, 0, 0))
    w_out_spec = pl.BlockSpec((num_heads, d_k, D), lambda b, qi, ki: (0, 0, 0))
    b_out_spec = pl.BlockSpec((1, D), lambda b, qi, ki: (0, 0))

    return pl.pallas_call(
        _mha_flash_kernel,
        out_shape=jax.ShapeDtypeStruct((B, Sq, D), out_dtype),
        grid_spec=pltpu.PrefetchScalarGridSpec(
            num_scalar_prefetch=0,
            # KV (reduction) axis innermost & 'arbitrary'; batch and q-tile axes
            # 'parallel' so megacore (v7x: 2 TCs) can shard B x n_q iterations.
            grid=(B, n_q, n_kv),
            in_specs=[q_spec, kv_spec, kv_spec,
                      w_in_spec, b_in_spec,     # Q_linear
                      w_in_spec, b_in_spec,     # K_linear
                      w_in_spec, b_in_spec,     # V_linear
                      w_out_spec, b_out_spec],  # output_linear
            out_specs=out_spec,
            scratch_shapes=[
                pltpu.VMEM((num_heads, tq, d_k), compute_dtype),  # cached Q proj
                pltpu.VMEM((num_heads, tq, 1), jnp.float32),      # running max m
                pltpu.VMEM((num_heads, tq, 1), jnp.float32),      # running sum l
                pltpu.VMEM((num_heads, tq, d_k), jnp.float32),    # output accum
            ]),
        compiler_params=pltpu.CompilerParams(
            dimension_semantics=("parallel", "parallel", "arbitrary"),
            vmem_limit_bytes=64 * 1024 * 1024),
    )(Qc, Kc, Vc, wq, bq, wk, bk, wv, bv, wo, bo)


def _reference(Q, K, V, params, *, num_heads):
    """Plain-JAX (f32) reference reproducing the PyTorch forward."""
    D = Q.shape[-1]
    d_k = D // num_heads

    def lin(x, w, b):
        return x @ w + b

    def split(x):
        b, s, _ = x.shape
        return x.reshape(b, s, num_heads, d_k).transpose(0, 2, 1, 3)

    q = split(lin(Q, params["wq"], params["bq"]))
    k = split(lin(K, params["wk"], params["bk"]))
    v = split(lin(V, params["wv"], params["bv"]))
    attn = jax.nn.softmax(q @ jnp.swapaxes(k, -2, -1) / math.sqrt(d_k), axis=-1)
    o = attn @ v
    b, h, s, _ = o.shape
    o = o.transpose(0, 2, 1, 3).reshape(b, s, D)
    return lin(o, params["wo"], params["bo"])


if __name__ == "__main__":
    B, S, D, H = 2, 8, 32, 4

    key = jax.random.PRNGKey(0)
    keys = jax.random.split(key, 11)

    # Deterministic parameter init, mimicking torch.nn.Linear's uniform init
    # bound = 1/sqrt(in_features). Weights stored as (in, out).
    bound = 1.0 / math.sqrt(D)

    def u(k, shape):
        return jax.random.uniform(k, shape, jnp.float32, minval=-bound, maxval=bound)

    params = {
        "wq": u(keys[0], (D, D)), "bq": u(keys[1], (D,)),
        "wk": u(keys[2], (D, D)), "bk": u(keys[3], (D,)),
        "wv": u(keys[4], (D, D)), "bv": u(keys[5], (D,)),
        "wo": u(keys[6], (D, D)), "bo": u(keys[7], (D,)),
    }

    Q = jax.random.normal(keys[8], (B, S, D), jnp.float32)
    K = jax.random.normal(keys[9], (B, S, D), jnp.float32)
    V = jax.random.normal(keys[10], (B, S, D), jnp.float32)

    ref = _reference(Q, K, V, params, num_heads=H)

    # f32 MXU operands (v5e-style path): deviation vs reference is only the
    # f32-vs-f64 gap plus the approximate softmax reciprocal.
    out_f32 = multi_head_attention(Q, K, V, params, num_heads=H,
                                   compute_dtype=jnp.float32)
    out_f32 = jax.block_until_ready(out_f32)
    assert out_f32.shape == (B, S, D)
    assert jnp.allclose(out_f32, ref, atol=1e-2, rtol=1e-2), "f32 mismatch vs reference"

    # bf16 MXU operands with f32 accumulation (v6e/v7x recommended path).
    out_bf16 = multi_head_attention(Q, K, V, params, num_heads=H,
                                    compute_dtype=jnp.bfloat16)
    out_bf16 = jax.block_until_ready(out_bf16)
    assert out_bf16.shape == (B, S, D)
    assert jnp.allclose(out_bf16, ref, atol=5e-2, rtol=5e-2), "bf16 mismatch vs reference"

    print("KERNEL_OK")
</pallas_src>

<mosaic_0001>
module attributes {stable_mosaic.version = 11 : i64} {
  func.func @_mha_flash_kernel(%arg0: i32, %arg1: i32, %arg2: i32, %arg3: memref<1x8x32xf32, #tpu.memory_space<vmem>>, %arg4: memref<1x8x32xf32, #tpu.memory_space<vmem>>, %arg5: memref<1x8x32xf32, #tpu.memory_space<vmem>>, %arg6: memref<4x32x8xf32, #tpu.memory_space<vmem>>, %arg7: memref<4x1x8xf32, #tpu.memory_space<vmem>>, %arg8: memref<4x32x8xf32, #tpu.memory_space<vmem>>, %arg9: memref<4x1x8xf32, #tpu.memory_space<vmem>>, %arg10: memref<4x32x8xf32, #tpu.memory_space<vmem>>, %arg11: memref<4x1x8xf32, #tpu.memory_space<vmem>>, %arg12: memref<4x8x32xf32, #tpu.memory_space<vmem>>, %arg13: memref<1x32xf32, #tpu.memory_space<vmem>>, %arg14: memref<1x8x32xf32, #tpu.memory_space<vmem>>, %arg15: memref<4x8x8xf32, #tpu.memory_space<vmem>>, %arg16: memref<4x8x1xf32, #tpu.memory_space<vmem>>, %arg17: memref<4x8x1xf32, #tpu.memory_space<vmem>>, %arg18: memref<4x8x8xf32, #tpu.memory_space<vmem>>) attributes {dimension_semantics = [#tpu.dimension_semantics<parallel>, #tpu.dimension_semantics<parallel>, #tpu.dimension_semantics<arbitrary>], iteration_bounds = array<i64: 2, 1, 1>, scalar_prefetch = 0 : i64, scratch_operands = 4 : i64, tpu.core_type = #tpu.core_type<tc>, window_params = [{transform_indices = @transform_0, window_bounds = array<i64: 1, 8, 32>}, {transform_indices = @transform_1, window_bounds = array<i64: 1, 8, 32>}, {transform_indices = @transform_2, window_bounds = array<i64: 1, 8, 32>}, {pipeline_mode = #tpu.pipeline_mode<synchronous>, transform_indices = @transform_3, window_bounds = array<i64: 4, 32, 8>}, {pipeline_mode = #tpu.pipeline_mode<synchronous>, transform_indices = @transform_4, window_bounds = array<i64: 4, 1, 8>}, {pipeline_mode = #tpu.pipeline_mode<synchronous>, transform_indices = @transform_5, window_bounds = array<i64: 4, 32, 8>}, {pipeline_mode = #tpu.pipeline_mode<synchronous>, transform_indices = @transform_6, window_bounds = array<i64: 4, 1, 8>}, {pipeline_mode = #tpu.pipeline_mode<synchronous>, transform_indices = @transform_7, window_bounds = array<i64: 4, 32, 8>}, {pipeline_mode = #tpu.pipeline_mode<synchronous>, transform_indices = @transform_8, window_bounds = array<i64: 4, 1, 8>}, {pipeline_mode = #tpu.pipeline_mode<synchronous>, transform_indices = @transform_9, window_bounds = array<i64: 4, 8, 32>}, {pipeline_mode = #tpu.pipeline_mode<synchronous>, transform_indices = @transform_10, window_bounds = array<i64: 1, 32>}, {transform_indices = @transform_11, window_bounds = array<i64: 1, 8, 32>}]} {
    %c0_i32 = arith.constant 0 : i32
    %0 = arith.cmpi eq, %arg2, %c0_i32 : i32
    %1 = arith.extui %0 : i1 to i32
    %c0_i32_0 = arith.constant 0 : i32
    %2 = arith.cmpi ne, %1, %c0_i32_0 : i32
    scf.if %2 {
      %c0_46 = arith.constant 0 : index
      %c0_47 = arith.constant 0 : index
      %c0_48 = arith.constant 0 : index
      %48 = vector.load %arg3[%c0_46, %c0_47, %c0_48] : memref<1x8x32xf32, #tpu.memory_space<vmem>>, vector<1x8x32xf32>
      %49 = vector.shape_cast %48 : vector<1x8x32xf32> to vector<8x32xf32>
      %50 = vector.shape_cast %49 : vector<8x32xf32> to vector<1x8x32xf32>
      %51 = vector.broadcast %50 : vector<1x8x32xf32> to vector<4x8x32xf32>
      %c0_49 = arith.constant 0 : index
      %c0_50 = arith.constant 0 : index
      %c0_51 = arith.constant 0 : index
      %52 = vector.load %arg6[%c0_49, %c0_50, %c0_51] : memref<4x32x8xf32, #tpu.memory_space<vmem>>, vector<4x32x8xf32>
      "tpu.trace_start"() <{level = 10 : i32, message = "hsD,hDd->hsd"}> : () -> ()
      %cst_52 = arith.constant dense<0.000000e+00> : vector<4x8x8xf32>
      %53 = tpu.matmul %51, %52, %cst_52 {dimension_numbers = #tpu.dot_dimension_numbers<[2], [1], [1], [2], [0, 0, 0, 1, 1, 2], [0], [0]>} : vector<4x8x32xf32>, vector<4x32x8xf32>, vector<4x8x8xf32> -> vector<4x8x8xf32>
      "tpu.trace_stop"() : () -> ()
      %c0_53 = arith.constant 0 : index
      %c0_54 = arith.constant 0 : index
      %c0_55 = arith.constant 0 : index
      %54 = vector.load %arg7[%c0_53, %c0_54, %c0_55] : memref<4x1x8xf32, #tpu.memory_space<vmem>>, vector<4x1x8xf32>
      %55 = vector.broadcast %54 : vector<4x1x8xf32> to vector<4x8x8xf32>
      %56 = arith.addf %53, %55 : vector<4x8x8xf32>
      %c0_56 = arith.constant 0 : index
      %c0_57 = arith.constant 0 : index
      %c0_58 = arith.constant 0 : index
      %57 = vector.load %arg15[%c0_56, %c0_57, %c0_58] : memref<4x8x8xf32, #tpu.memory_space<vmem>>, vector<4x8x8xf32>
      tpu.vector_store %arg15[%c0_56, %c0_57, %c0_58], %56 {strides = array<i32>} : memref<4x8x8xf32, #tpu.memory_space<vmem>>, vector<4x8x8xf32>,
      %cst_59 = arith.constant 0xFF800000 : f32
      %58 = vector.broadcast %cst_59 : f32 to vector<4x8x1xf32>
      %c0_60 = arith.constant 0 : index
      %c0_61 = arith.constant 0 : index
      %c0_62 = arith.constant 0 : index
      %59 = vector.load %arg16[%c0_60, %c0_61, %c0_62] : memref<4x8x1xf32, #tpu.memory_space<vmem>>, vector<4x8x1xf32>
      tpu.vector_store %arg16[%c0_60, %c0_61, %c0_62], %58 {strides = array<i32>} : memref<4x8x1xf32, #tpu.memory_space<vmem>>, vector<4x8x1xf32>,
      %cst_63 = arith.constant 0.000000e+00 : f32
      %60 = vector.broadcast %cst_63 : f32 to vector<4x8x1xf32>
      %c0_64 = arith.constant 0 : index
      %c0_65 = arith.constant 0 : index
      %c0_66 = arith.constant 0 : index
      %61 = vector.load %arg17[%c0_64, %c0_65, %c0_66] : memref<4x8x1xf32, #tpu.memory_space<vmem>>, vector<4x8x1xf32>
      tpu.vector_store %arg17[%c0_64, %c0_65, %c0_66], %60 {strides = array<i32>} : memref<4x8x1xf32, #tpu.memory_space<vmem>>, vector<4x8x1xf32>,
      %cst_67 = arith.constant 0.000000e+00 : f32
      %62 = vector.broadcast %cst_67 : f32 to vector<4x8x8xf32>
      %c0_68 = arith.constant 0 : index
      %c0_69 = arith.constant 0 : index
      %c0_70 = arith.constant 0 : index
      %63 = vector.load %arg18[%c0_68, %c0_69, %c0_70] : memref<4x8x8xf32, #tpu.memory_space<vmem>>, vector<4x8x8xf32>
      tpu.vector_store %arg18[%c0_68, %c0_69, %c0_70], %62 {strides = array<i32>} : memref<4x8x8xf32, #tpu.memory_space<vmem>>, vector<4x8x8xf32>,
    } else {
    }
    %c0 = arith.constant 0 : index
    %c0_1 = arith.constant 0 : index
    %c0_2 = arith.constant 0 : index
    %3 = vector.load %arg4[%c0, %c0_1, %c0_2] : memref<1x8x32xf32, #tpu.memory_space<vmem>>, vector<1x8x32xf32>
    %4 = vector.shape_cast %3 : vector<1x8x32xf32> to vector<8x32xf32>
    %5 = vector.shape_cast %4 : vector<8x32xf32> to vector<1x8x32xf32>
    %6 = vector.broadcast %5 : vector<1x8x32xf32> to vector<4x8x32xf32>
    %c0_3 = arith.constant 0 : index
    %c0_4 = arith.constant 0 : index
    %c0_5 = arith.constant 0 : index
    %7 = vector.load %arg5[%c0_3, %c0_4, %c0_5] : memref<1x8x32xf32, #tpu.memory_space<vmem>>, vector<1x8x32xf32>
    %8 = vector.shape_cast %7 : vector<1x8x32xf32> to vector<8x32xf32>
    %9 = vector.shape_cast %8 : vector<8x32xf32> to vector<1x8x32xf32>
    %10 = vector.broadcast %9 : vector<1x8x32xf32> to vector<4x8x32xf32>
    %c0_6 = arith.constant 0 : index
    %c0_7 = arith.constant 0 : index
    %c0_8 = arith.constant 0 : index
    %11 = vector.load %arg8[%c0_6, %c0_7, %c0_8] : memref<4x32x8xf32, #tpu.memory_space<vmem>>, vector<4x32x8xf32>
    "tpu.trace_start"() <{level = 10 : i32, message = "hsD,hDd->hsd"}> : () -> ()
    %cst = arith.constant dense<0.000000e+00> : vector<4x8x8xf32>
    %12 = tpu.matmul %6, %11, %cst {dimension_numbers = #tpu.dot_dimension_numbers<[2], [1], [1], [2], [0, 0, 0, 1, 1, 2], [0], [0]>} : vector<4x8x32xf32>, vector<4x32x8xf32>, vector<4x8x8xf32> -> vector<4x8x8xf32>
    "tpu.trace_stop"() : () -> ()
    %c0_9 = arith.constant 0 : index
    %c0_10 = arith.constant 0 : index
    %c0_11 = arith.constant 0 : index
    %13 = vector.load %arg9[%c0_9, %c0_10, %c0_11] : memref<4x1x8xf32, #tpu.memory_space<vmem>>, vector<4x1x8xf32>
    %14 = vector.broadcast %13 : vector<4x1x8xf32> to vector<4x8x8xf32>
    %15 = arith.addf %12, %14 : vector<4x8x8xf32>
    %c0_12 = arith.constant 0 : index
    %c0_13 = arith.constant 0 : index
    %c0_14 = arith.constant 0 : index
    %16 = vector.load %arg10[%c0_12, %c0_13, %c0_14] : memref<4x32x8xf32, #tpu.memory_space<vmem>>, vector<4x32x8xf32>
    "tpu.trace_start"() <{level = 10 : i32, message = "hsD,hDd->hsd"}> : () -> ()
    %cst_15 = arith.constant dense<0.000000e+00> : vector<4x8x8xf32>
    %17 = tpu.matmul %10, %16, %cst_15 {dimension_numbers = #tpu.dot_dimension_numbers<[2], [1], [1], [2], [0, 0, 0, 1, 1, 2], [0], [0]>} : vector<4x8x32xf32>, vector<4x32x8xf32>, vector<4x8x8xf32> -> vector<4x8x8xf32>
    "tpu.trace_stop"() : () -> ()
    %c0_16 = arith.constant 0 : index
    %c0_17 = arith.constant 0 : index
    %c0_18 = arith.constant 0 : index
    %18 = vector.load %arg11[%c0_16, %c0_17, %c0_18] : memref<4x1x8xf32, #tpu.memory_space<vmem>>, vector<4x1x8xf32>
    %19 = vector.broadcast %18 : vector<4x1x8xf32> to vector<4x8x8xf32>
    %20 = arith.addf %17, %19 : vector<4x8x8xf32>
    %c0_19 = arith.constant 0 : index
    %c0_20 = arith.constant 0 : index
    %c0_21 = arith.constant 0 : index
    %21 = vector.load %arg15[%c0_19, %c0_20, %c0_21] : memref<4x8x8xf32, #tpu.memory_space<vmem>>, vector<4x8x8xf32>
    "tpu.trace_start"() <{level = 10 : i32, message = "hqd,hkd->hqk"}> : () -> ()
    %cst_22 = arith.constant dense<0.000000e+00> : vector<4x8x8xf32>
    %22 = tpu.matmul %21, %15, %cst_22 {dimension_numbers = #tpu.dot_dimension_numbers<[2], [2], [1], [1], [0, 0, 0, 1, 1, 1], [0], [0]>} : vector<4x8x8xf32>, vector<4x8x8xf32>, vector<4x8x8xf32> -> vector<4x8x8xf32>
    "tpu.trace_stop"() : () -> ()
    %c0_23 = arith.constant 0 : index
    %c0_24 = arith.constant 0 : index
    %c0_25 = arith.constant 0 : index
    %23 = vector.load %arg16[%c0_23, %c0_24, %c0_25] : memref<4x8x1xf32, #tpu.memory_space<vmem>>, vector<4x8x1xf32>
    %cst_26 = arith.constant dense<0xFF800000> : vector<4x8xf32>
    %24 = vector.multi_reduction <maximumf>, %22, %cst_26 [2] : vector<4x8x8xf32> to vector<4x8xf32>
    %25 = vector.shape_cast %24 : vector<4x8xf32> to vector<4x8x1xf32>
    %26 = arith.maximumf %23, %25 : vector<4x8x1xf32>
    %27 = arith.subf %23, %26 : vector<4x8x1xf32>
    %28 = math.exp %27 : vector<4x8x1xf32>
    %29 = vector.broadcast %26 : vector<4x8x1xf32> to vector<4x8x8xf32>
    %30 = arith.subf %22, %29 : vector<4x8x8xf32>
    %31 = math.exp %30 : vector<4x8x8xf32>
    %c0_27 = arith.constant 0 : index
    %c0_28 = arith.constant 0 : index
    %c0_29 = arith.constant 0 : index
    %32 = vector.load %arg17[%c0_27, %c0_28, %c0_29] : memref<4x8x1xf32, #tpu.memory_space<vmem>>, vector<4x8x1xf32>
    %33 = arith.mulf %28, %32 : vector<4x8x1xf32>
    %cst_30 = arith.constant dense<0.000000e+00> : vector<4x8xf32>
    %34 = vector.multi_reduction <add>, %31, %cst_30 [2] : vector<4x8x8xf32> to vector<4x8xf32>
    %35 = vector.shape_cast %34 : vector<4x8xf32> to vector<4x8x1xf32>
    %36 = arith.addf %33, %35 : vector<4x8x1xf32>
    %c0_31 = arith.constant 0 : index
    %c0_32 = arith.constant 0 : index
    %c0_33 = arith.constant 0 : index
    %37 = vector.load %arg17[%c0_31, %c0_32, %c0_33] : memref<4x8x1xf32, #tpu.memory_space<vmem>>, vector<4x8x1xf32>
    tpu.vector_store %arg17[%c0_31, %c0_32, %c0_33], %36 {strides = array<i32>} : memref<4x8x1xf32, #tpu.memory_space<vmem>>, vector<4x8x1xf32>,
    %c0_34 = arith.constant 0 : index
    %c0_35 = arith.constant 0 : index
    %c0_36 = arith.constant 0 : index
    %38 = vector.load %arg18[%c0_34, %c0_35, %c0_36] : memref<4x8x8xf32, #tpu.memory_space<vmem>>, vector<4x8x8xf32>
    %39 = vector.broadcast %28 : vector<4x8x1xf32> to vector<4x8x8xf32>
    %40 = arith.mulf %39, %38 : vector<4x8x8xf32>
    "tpu.trace_start"() <{level = 10 : i32, message = "hqk,hkd->hqd"}> : () -> ()
    %cst_37 = arith.constant dense<0.000000e+00> : vector<4x8x8xf32>
    %41 = tpu.matmul %31, %20, %cst_37 {dimension_numbers = #tpu.dot_dimension_numbers<[2], [1], [1], [2], [0, 0, 0, 1, 1, 2], [0], [0]>} : vector<4x8x8xf32>, vector<4x8x8xf32>, vector<4x8x8xf32> -> vector<4x8x8xf32>
    "tpu.trace_stop"() : () -> ()
    %42 = arith.addf %40, %41 : vector<4x8x8xf32>
    %c0_38 = arith.constant 0 : index
    %c0_39 = arith.constant 0 : index
    %c0_40 = arith.constant 0 : index
    %43 = vector.load %arg18[%c0_38, %c0_39, %c0_40] : memref<4x8x8xf32, #tpu.memory_space<vmem>>, vector<4x8x8xf32>
    tpu.vector_store %arg18[%c0_38, %c0_39, %c0_40], %42 {strides = array<i32>} : memref<4x8x8xf32, #tpu.memory_space<vmem>>, vector<4x8x8xf32>,
    %c0_41 = arith.constant 0 : index
    %c0_42 = arith.constant 0 : index
    %c0_43 = arith.constant 0 : index
    %44 = vector.load %arg16[%c0_41, %c0_42, %c0_43] : memref<4x8x1xf32, #tpu.memory_space<vmem>>, vector<4x8x1xf32>
    tpu.vector_store %arg16[%c0_41, %c0_42, %c0_43], %26 {strides = array<i32>} : memref<4x8x1xf32, #tpu.memory_space<vmem>>, vector<4x8x1xf32>,
    %c0_i32_44 = arith.constant 0 : i32
    %45 = arith.cmpi eq, %arg2, %c0_i32_44 : i32
    %46 = arith.extui %45 : i1 to i32
    %c0_i32_45 = arith.constant 0 : i32
    %47 = arith.cmpi ne, %46, %c0_i32_45 : i32
    scf.if %47 {
      %c0_46 = arith.constant 0 : index
      %c0_47 = arith.constant 0 : index
      %c0_48 = arith.constant 0 : index
      %48 = vector.load %arg17[%c0_46, %c0_47, %c0_48] : memref<4x8x1xf32, #tpu.memory_space<vmem>>, vector<4x8x1xf32>
      %49 = tpu.reciprocal %48 {approx = true} : vector<4x8x1xf32> -> vector<4x8x1xf32>
      %c0_49 = arith.constant 0 : index
      %c0_50 = arith.constant 0 : index
      %c0_51 = arith.constant 0 : index
      %50 = vector.load %arg18[%c0_49, %c0_50, %c0_51] : memref<4x8x8xf32, #tpu.memory_space<vmem>>, vector<4x8x8xf32>
      %51 = vector.broadcast %49 : vector<4x8x1xf32> to vector<4x8x8xf32>
      %52 = arith.mulf %50, %51 : vector<4x8x8xf32>
      %c0_52 = arith.constant 0 : index
      %c0_53 = arith.constant 0 : index
      %c0_54 = arith.constant 0 : index
      %53 = vector.load %arg12[%c0_52, %c0_53, %c0_54] : memref<4x8x32xf32, #tpu.memory_space<vmem>>, vector<4x8x32xf32>
      "tpu.trace_start"() <{level = 10 : i32, message = "hqd,hdD->hqD"}> : () -> ()
      %cst_55 = arith.constant dense<0.000000e+00> : vector<4x8x32xf32>
      %54 = tpu.matmul %52, %53, %cst_55 {dimension_numbers = #tpu.dot_dimension_numbers<[2], [1], [1], [2], [0, 0, 0, 1, 1, 2], [0], [0]>} : vector<4x8x8xf32>, vector<4x8x32xf32>, vector<4x8x32xf32> -> vector<4x8x32xf32>
      "tpu.trace_stop"() : () -> ()
      %cst_56 = arith.constant dense<0.000000e+00> : vector<8x32xf32>
      %55 = vector.multi_reduction <add>, %54, %cst_56 [0] : vector<4x8x32xf32> to vector<8x32xf32>
      %c0_57 = arith.constant 0 : index
      %c0_58 = arith.constant 0 : index
      %56 = vector.load %arg13[%c0_57, %c0_58] : memref<1x32xf32, #tpu.memory_space<vmem>>, vector<1x32xf32>
      %57 = vector.shape_cast %56 : vector<1x32xf32> to vector<32xf32>
      %58 = vector.shape_cast %57 : vector<32xf32> to vector<1x32xf32>
      %59 = vector.broadcast %58 : vector<1x32xf32> to vector<8x32xf32>
      %60 = arith.addf %55, %59 : vector<8x32xf32>
      %c0_59 = arith.constant 0 : index
      %c0_60 = arith.constant 0 : index
      %c0_61 = arith.constant 0 : index
      %61 = vector.load %arg14[%c0_59, %c0_60, %c0_61] : memref<1x8x32xf32, #tpu.memory_space<vmem>>, vector<1x8x32xf32>
      %62 = vector.shape_cast %61 : vector<1x8x32xf32> to vector<8x32xf32>
      %63 = vector.shape_cast %60 : vector<8x32xf32> to vector<1x8x32xf32>
      tpu.vector_store %arg14[%c0_59, %c0_60, %c0_61], %63 {strides = array<i32>} : memref<1x8x32xf32, #tpu.memory_space<vmem>>, vector<1x8x32xf32>,
    } else {
    }
    return
  }
  func.func @transform_0(%arg0: i32, %arg1: i32, %arg2: i32) -> (i32, i32, i32) {
    %c0_i32 = arith.constant 0 : i32
    %c0_i32_0 = arith.constant 0 : i32
    return %arg0, %arg1, %c0_i32 : i32, i32, i32
  }
  func.func @transform_1(%arg0: i32, %arg1: i32, %arg2: i32) -> (i32, i32, i32) {
    %c0_i32 = arith.constant 0 : i32
    %c0_i32_0 = arith.constant 0 : i32
    return %arg0, %arg2, %c0_i32 : i32, i32, i32
  }
  func.func @transform_2(%arg0: i32, %arg1: i32, %arg2: i32) -> (i32, i32, i32) {
    %c0_i32 = arith.constant 0 : i32
    %c0_i32_0 = arith.constant 0 : i32
    return %arg0, %arg2, %c0_i32 : i32, i32, i32
  }
  func.func @transform_3(%arg0: i32, %arg1: i32, %arg2: i32) -> (i32, i32, i32) {
    %c0_i32 = arith.constant 0 : i32
    %c0_i32_0 = arith.constant 0 : i32
    %c0_i32_1 = arith.constant 0 : i32
    %c0_i32_2 = arith.constant 0 : i32
    return %c0_i32, %c0_i32_0, %c0_i32_1 : i32, i32, i32
  }
  func.func @transform_4(%arg0: i32, %arg1: i32, %arg2: i32) -> (i32, i32, i32) {
    %c0_i32 = arith.constant 0 : i32
    %c0_i32_0 = arith.constant 0 : i32
    %c0_i32_1 = arith.constant 0 : i32
    %c0_i32_2 = arith.constant 0 : i32
    return %c0_i32, %c0_i32_0, %c0_i32_1 : i32, i32, i32
  }
  func.func @transform_5(%arg0: i32, %arg1: i32, %arg2: i32) -> (i32, i32, i32) {
    %c0_i32 = arith.constant 0 : i32
    %c0_i32_0 = arith.constant 0 : i32
    %c0_i32_1 = arith.constant 0 : i32
    %c0_i32_2 = arith.constant 0 : i32
    return %c0_i32, %c0_i32_0, %c0_i32_1 : i32, i32, i32
  }
  func.func @transform_6(%arg0: i32, %arg1: i32, %arg2: i32) -> (i32, i32, i32) {
    %c0_i32 = arith.constant 0 : i32
    %c0_i32_0 = arith.constant 0 : i32
    %c0_i32_1 = arith.constant 0 : i32
    %c0_i32_2 = arith.constant 0 : i32
    return %c0_i32, %c0_i32_0, %c0_i32_1 : i32, i32, i32
  }
  func.func @transform_7(%arg0: i32, %arg1: i32, %arg2: i32) -> (i32, i32, i32) {
    %c0_i32 = arith.constant 0 : i32
    %c0_i32_0 = arith.constant 0 : i32
    %c0_i32_1 = arith.constant 0 : i32
    %c0_i32_2 = arith.constant 0 : i32
    return %c0_i32, %c0_i32_0, %c0_i32_1 : i32, i32, i32
  }
  func.func @transform_8(%arg0: i32, %arg1: i32, %arg2: i32) -> (i32, i32, i32) {
    %c0_i32 = arith.constant 0 : i32
    %c0_i32_0 = arith.constant 0 : i32
    %c0_i32_1 = arith.constant 0 : i32
    %c0_i32_2 = arith.constant 0 : i32
    return %c0_i32, %c0_i32_0, %c0_i32_1 : i32, i32, i32
  }
  func.func @transform_9(%arg0: i32, %arg1: i32, %arg2: i32) -> (i32, i32, i32) {
    %c0_i32 = arith.constant 0 : i32
    %c0_i32_0 = arith.constant 0 : i32
    %c0_i32_1 = arith.constant 0 : i32
    %c0_i32_2 = arith.constant 0 : i32
    return %c0_i32, %c0_i32_0, %c0_i32_1 : i32, i32, i32
  }
  func.func @transform_10(%arg0: i32, %arg1: i32, %arg2: i32) -> (i32, i32) {
    %c0_i32 = arith.constant 0 : i32
    %c0_i32_0 = arith.constant 0 : i32
    %c0_i32_1 = arith.constant 0 : i32
    return %c0_i32, %c0_i32_0 : i32, i32
  }
  func.func @transform_11(%arg0: i32, %arg1: i32, %arg2: i32) -> (i32, i32, i32) {
    %c0_i32 = arith.constant 0 : i32
    %c0_i32_0 = arith.constant 0 : i32
    return %arg0, %arg1, %c0_i32 : i32, i32, i32
  }
}

</mosaic_0001>

<bundles_post_ra>
// kernel: tpu_custom_call.1
= control target key start
LH: loop header
LB: loop body
LE: loop exit
PB: predicated region body
PF: predicated region fallthrough
CT: control target
= control target key end

     0   :  { %s4710_s0 = inlined_call_operand.hbm [shape: f32[2,8,32], index: 0, kind: input, shape index: {}]   ;;  %s4711_s1 = inlined_call_operand.hbm [shape: f32[2,8,32], index: 1, kind: input, shape index: {}]   ;;  %s4712_s2 = inlined_call_operand.hbm [shape: f32[2,8,32], index: 2, kind: input, shape index: {}]   ;;  %s4713_s3 = inlined_call_operand.hbm [shape: f32[4,32,8], index: 3, kind: input, shape index: {}]   ;;  %s4714_s4 = inlined_call_operand.hbm [shape: f32[4,1,8], index: 4, kind: input, shape index: {}]   ;;  %s4715_s5 = inlined_call_operand.hbm [shape: f32[4,32,8], index: 5, kind: input, shape index: {}]   ;;  %s4716_s6 = inlined_call_operand.hbm [shape: f32[4,1,8], index: 6, kind: input, shape index: {}]   ;;  %s4717_s7 = inlined_call_operand.hbm [shape: f32[4,32,8], index: 7, kind: input, shape index: {}]   ;;  %s4718_s8 = inlined_call_operand.hbm [shape: f32[4,1,8], index: 8, kind: input, shape index: {}]   ;;  %s4719_s9 = inlined_call_operand.hbm [shape: f32[4,8,32], index: 9, kind: input, shape index: {}]   ;;  %s4720_s10 = inlined_call_operand.hbm [shape: f32[1,32], index: 10, kind: input, shape index: {}]   ;;  %s4721_s11 = inlined_call_operand.hbm [shape: f32[2,8,32], index: 11, kind: output, shape index: {}]  }
   0x1   :  { %4744 = sst [smem:[#allocation39_spill]] %s4711_s1 }
   0x2   :  { %4745 = sst [smem:[#allocation40_spill]] %s4712_s2 }
   0x3   :  { %4746 = sst [smem:[#allocation41_spill]] %s4713_s3 }
   0x4   :  { %4747 = sst [smem:[#allocation42_spill]] %s4714_s4 }
   0x5   :  { %4748 = sst [smem:[#allocation43_spill]] %s4715_s5 }
   0x6   :  { %4749 = sst [smem:[#allocation44_spill]] %s4716_s6 }
   0x7   :  { %4750 = sst [smem:[#allocation45_spill]] %s4717_s7 }
   0x8   :  { %4751 = sst [smem:[#allocation46_spill]] %s4719_s9 }
   0x9   :  { %4752 = sst [smem:[#allocation47_spill]] %s4720_s10 }
   0xa   :  { %4753 = sst [smem:[#allocation48_spill]] %s4721_s11 }
   0xb   :  { %16 = vsyncpa [#allocation7], 0 }
   0xc   :  { %18 = vsyncpa [#allocation7 + $0x1], 0 }
   0xd   :  { %19 = vsyncpa [#allocation10], 0 }
   0xe   :  { %21 = vsyncpa [#allocation10 + $0x1], 0 }
   0xf   :  { %22 = vsyncpa [#allocation13], 0 }
  0x10   :  { %23 = vsyncpa [#allocation16], 0 }
  0x11   :  { %24 = vsyncpa [#allocation19], 0 }
  0x12   :  { %25 = vsyncpa [#allocation22], 0 }
  0x13   :  { %26 = vsyncpa [#allocation8], 0 }
  0x14   :  { %28 = vsyncpa [#allocation8 + $0x1], 0  ;;  %s4040_s17 = smov 0   ;;  %s4042_s18 = smov 0  }
  0x15   :  { %s4044_s19 = smov 0   ;;  %s4046_s20 = smov 0  }
  0x16   :  { %s4048_s21 = smov 0   ;;  %s4050_s22 = smov 0  }
  0x17 LB: > { %4754 = sst [smem:[#allocation32_spill]] %s3949_s20  ;;  %s4071_s23 = sadd.s32 4294967295, %s3957_s22   ;;  %s3957_s22 = sphi %s4050_s22, %s34_s22   ;;  %s3953_s21 = sphi %s4048_s21, %s4806_s21   ;;  %s3949_s20 = sphi %s4046_s20, %s4810_s20   ;;  %s3945_s19 = sphi %s4044_s19, %s4809_s19   ;;  %s3941_s18 = sphi %s4042_s18, %s4808_s18   ;;  %s3937_s17 = sphi %s4040_s17, %s4807_s17  }
  0x18   : > { %4755 = sst [smem:[#allocation33_spill]] %s3953_s21  ;;  %p2931_p0 = scmp.ge.s32.totalorder %s3957_s22, 1 }
  0x19   : > { %4756 = sst [smem:[#allocation34_spill]] %s3957_s22  ;;  %p4726_p1 = scmp.eq.s32.totalorder %s4071_s23, 0 }
  0x1a   : > { %p338_p2 = scmp.lt.s32.totalorder %s3957_s22, 3  ;;  %s3959_s25 = smov [#allocation12]  }
  0x1b   : > { %s350_s26 = sshll.u32 %s3959_s25, 4  ;;  %s3960_s28 = smov [#allocation15]   ;;  %s4080_s26 = int_to_ptr.vmem [resolvable:$true] %s350_s26 }
  0x1c   : > { %p4076_p3 = pnand %p2931_p0, %p338_p2  ;;  %s376_s29 = sshll.u32 %s3960_s28, 4  ;;  %s4091_s29 = int_to_ptr.vmem [resolvable:$true] %s376_s29 }
  0x1d   : > { %s3961_s30 = smov [#allocation18]   ;;  %s4760_s3 = sld [smem:[#allocation41_spill]] }
  0x1e   : > { %s4757_s24 = scalar_select %p4076_p3, 1, 0 }
  0x1f   : > { %p3393_p4 = pneg %p4076_p3  ;;  %s4093_s12 = sshll.u32 %s3961_s30, 4  ;;  %s403_s12 = int_to_ptr.vmem [resolvable:$true] %s4093_s12 }
  0x20   : > { %4758 = sst [smem:[#allocation35_spill]] %s4757_s24 }
  0x21   : > { %p4087_p6 = pnand %p3393_p4, %p4726_p1 }
  0x23   : > { %s4759_s27 = scalar_select %p4087_p6, 1, 0 }
  0x24   : > { %s3541_s15 = scalar_lea.hbm %s4760_s3, 2048  ;;  %p4103_p8 = pneg %p4087_p6 }
  0x25   : > { %p3542_p7 = scmp.ne.s32.totalorder %s4760_s3, %s3541_s15  ;;  %p3548_p11 = scmp.lt.u32.totalorder %s3541_s15, %s4760_s3 }
  0x26   : > { %s4761_s11 = scalar_select %p4103_p8, 1, 0 }
  0x27   : > { %p3544_p9 = pnand %p4103_p8, %p3542_p7 }
  0x29   : > { %p3545_p10 = pneg %p3544_p9 }
  0x2b   : > { %p3550_p12 = pnand %p3548_p11, %p3545_p10 }
  0x2d   : > { %3553 = shalt.err (!%p3550_p12)
}
  0x2e   : > { %s3554_s13 = scalar_lea.vmem %s4080_s26, 2048  ;;  %p3562_p4 = scmp.lt.s32.totalorder %s4080_s26, %s4080_s26 }
  0x2f   : > { %p3555_p13 = scmp.ne.s32.totalorder %s4080_s26, %s3554_s13  ;;  %p3563_p5 = scmp.lt.s32.totalorder %s3554_s13, %s3554_s13 }
  0x31   : > { %p3557_p0 = pnand %p3555_p13, %p4103_p8  ;;  %p3564_p7 = por %p3563_p5, %p3562_p4 }
  0x33   : > { %p3558_p2 = pneg %p3557_p0 }
  0x35   : > { %p3565_p9 = pnand %p3564_p7, %p3558_p2 }
  0x37   : > { %3568 = shalt.err (!%p3565_p9)
}
  0x38   : > { %s3962_s14 = smov 128   ;;  %s3963_s15 = smov 8  }
  0x39   : > { %3396 = dma.hbm_to_vmem [thread:$0]  (!%p4087_p6), %s4760_s3, 2048, %s4080_s26, [#allocation13], %s3962_s14, %s3962_s14, %s3963_s15  }
  0x3a   : > { %s4762_s5 = sld [smem:[#allocation43_spill]] }
  0x40   : > { %s3569_s13 = scalar_lea.hbm %s4762_s5, 2048 }
  0x41   : > { %p3570_p5 = scmp.ne.s32.totalorder %s4762_s5, %s3569_s13  ;;  %p3576_p12 = scmp.lt.u32.totalorder %s3569_s13, %s4762_s5 }
  0x43   : > { %p3572_p10 = pnand %p3570_p5, %p4103_p8 }
  0x45   : > { %p3573_p11 = pneg %p3572_p10 }
  0x47   : > { %p3578_p13 = pnand %p3576_p12, %p3573_p11 }
  0x49   : > { %3581 = shalt.err (!%p3578_p13)
}
  0x4a   : > { %s3582_s26 = scalar_lea.vmem %s4091_s29, 2048  ;;  %p3590_p7 = scmp.lt.s32.totalorder %s4091_s29, %s4091_s29 }
  0x4b   : > { %p3583_p0 = scmp.ne.s32.totalorder %s4091_s29, %s3582_s26  ;;  %p3591_p9 = scmp.lt.s32.totalorder %s3582_s26, %s3582_s26 }
  0x4d   : > { %p3585_p2 = pnand %p3583_p0, %p4103_p8  ;;  %p3592_p5 = por %p3591_p9, %p3590_p7 }
  0x4f   : > { %p3586_p4 = pneg %p3585_p2 }
  0x51   : > { %p3593_p10 = pnand %p3592_p5, %p3586_p4 }
  0x53   : > { %3596 = shalt.err (!%p3593_p10)
}
  0x54   : > { %3402 = dma.hbm_to_vmem [thread:$0]  (!%p4087_p6), %s4762_s5, 2048, %s4091_s29, [#allocation16], %s3962_s14, %s3962_s14, %s3963_s15  }
  0x55   : > { %s4763_s7 = sld [smem:[#allocation45_spill]] }
  0x5b   : > { %s3597_s16 = scalar_lea.hbm %s4763_s7, 2048 }
  0x5c   : > { %p3598_p11 = scmp.ne.s32.totalorder %s4763_s7, %s3597_s16  ;;  %p3604_p0 = scmp.lt.u32.totalorder %s3597_s16, %s4763_s7 }
  0x5e   : > { %p3600_p12 = pnand %p3598_p11, %p4103_p8 }
  0x60   : > { %p3601_p13 = pneg %p3600_p12 }
  0x62   : > { %p3606_p2 = pnand %p3604_p0, %p3601_p13 }
  0x64   : > { %3609 = shalt.err (!%p3606_p2)
}
  0x65   : > { %s3610_s26 = scalar_lea.vmem %s403_s12, 2048  ;;  %p3618_p5 = scmp.lt.s32.totalorder %s403_s12, %s403_s12 }
  0x66   : > { %p3611_p4 = scmp.ne.s32.totalorder %s403_s12, %s3610_s26  ;;  %p3619_p10 = scmp.lt.s32.totalorder %s3610_s26, %s3610_s26 }
  0x68   : > { %p3613_p7 = pnand %p3611_p4, %p4103_p8  ;;  %p3620_p1 = por %p3619_p10, %p3618_p5 }
  0x6a   : > { %p3614_p9 = pneg %p3613_p7 }
  0x6c   : > { %p3621_p3 = pnand %p3620_p1, %p3614_p9 }
  0x6e   : > { %3624 = shalt.err (!%p3621_p3)
}
  0x6f   : > { %3408 = dma.hbm_to_vmem [thread:$0]  (!%p4087_p6), %s4763_s7, 2048, %s403_s12, [#allocation19], %s3962_s14, %s3962_s14, %s3963_s15  }
  0x70   : > { %s3964_s10 = smov [#allocation21]   ;;  %s4764_s9 = sld [smem:[#allocation46_spill]] }
  0x71   : > { %s428_s20 = sshll.u32 %s3964_s10, 4  ;;  %s429_s20 = int_to_ptr.vmem [resolvable:$true] %s428_s20 }
  0x76   : > { %s3625_s25 = scalar_lea.hbm %s4764_s9, 512 }
  0x77   : > { %p3626_p1 = scmp.ne.s32.totalorder %s4764_s9, %s3625_s25  ;;  %p3632_p12 = scmp.lt.u32.totalorder %s3625_s25, %s4764_s9 }
  0x79   : > { %p3628_p3 = pnand %p3626_p1, %p4103_p8 }
  0x7b   : > { %p3629_p11 = pneg %p3628_p3 }
  0x7d   : > { %p3634_p13 = pnand %p3632_p12, %p3629_p11 }
  0x7f   : > { %3637 = shalt.err (!%p3634_p13)
}
  0x80   : > { %s3638_s12 = scalar_lea.vmem %s429_s20, 512  ;;  %p3646_p7 = scmp.lt.s32.totalorder %s429_s20, %s429_s20 }
  0x81   : > { %p3639_p0 = scmp.ne.s32.totalorder %s429_s20, %s3638_s12  ;;  %p3647_p9 = scmp.lt.s32.totalorder %s3638_s12, %s3638_s12 }
  0x83   : > { %p3641_p2 = pnand %p3639_p0, %p4103_p8  ;;  %p3648_p5 = por %p3647_p9, %p3646_p7 }
  0x85   : > { %p3642_p4 = pneg %p3641_p2 }
  0x87   : > { %p3649_p10 = pnand %p3648_p5, %p3642_p4 }
  0x89   : > { %3652 = shalt.err (!%p3649_p10)
}
  0x8a   : > { %3414 = dma.hbm_to_vmem [thread:$0]  (!%p4087_p6), %s4764_s9, 512, %s429_s20, [#allocation22], %s3962_s14, %s3962_s14, %s3963_s15  }
  0x8b   : > { %s2930_s10 = sadd.s32 4294967294, %s3957_s22   ;;  %s53_s24 = sadd.s32 1, %s3953_s21 }
  0x8c   : > { %p55_p1 = scmp.ge.s32.totalorder %s53_s24, 2  ;;  %s62_s16 = sadd.s32 1, %s3945_s19 }
  0x8d   : > { %p69_p3 = scmp.ne.s32.totalorder %s3945_s19, %s3941_s18  ;;  %p70_p11 = scmp.eq.s32.totalorder %s3957_s22, 0 }
  0x8e   : > { %s4812_s24 = smov (%p55_p1, %s53_s24), 0  ;;  %p75_p13 = scmp.ne.s32.totalorder %s3941_s18, %s3937_s17 }
  0x8f   : > { %4765 = sst [smem:[#allocation36_spill]] %s4812_s24  ;;  %p4204_p12 = por %p70_p11, %p69_p3 }
  0x90   : > { %s57_s14 = ssub.s32 %s3953_s21, %s4812_s24  ;;  %p325_p0 = scmp.eq.s32.totalorder %s4071_s23, 1 }
  0x91   : > { %p60_p2 = scmp.eq.s32.totalorder %s57_s14, 0  ;;  %p4767_p4 = scmp.eq.s32.totalorder %s4071_s23, 0 }
  0x92   : > { %p4219_p9 = por %p325_p0, %p69_p3  ;;  %p331_p5 = scmp.eq.s32.totalorder %s2930_s10, 1 }
  0x93   : > { %p4215_p7 = por %p4767_p4, %p75_p13  ;;  %p3440_p1 = scmp.lt.s32.totalorder %s3957_s22, 2 }
  0x94   : > { %s4769_s20 = scalar_select %p4219_p9, 1, 0 }
  0x95   : > { %s4768_s15 = scalar_select %p4215_p7, 1, 0 }
  0x96   : > { %s4224_s28 = scalar_select %p60_p2, %s3945_s19, %s62_s16  }
  0x97   : > { %p4226_p10 = por %p331_p5, %p75_p13  ;;  %s4728_s13 = sand.u32 1, %s3945_s19  }
  0x98   : > { %4770 = sst [smem:[#allocation37_spill]] %s4224_s28  ;;  %s4233_s26 = sshll.u32 %s3953_s21, 7 }
  0x99   : > { %s4771_s30 = scalar_select %p4226_p10, 1, 0 }
  0x9a   : > { %s4237_s12 = sshll.u32 %s4728_s13, 3  ;;  %p4241_p3 = pnand %p3440_p1, %p4204_p12 }
  0x9b   : > { %4772 = sst [smem:[#allocation38_spill]] %s4771_s30  ;;  %s472_s2 = sand.u32 1, %s3957_s22  }
  0x9c   : > { %s4773_s29 = scalar_select %p4241_p3, 1, 0 }
  0x9d   : > { %s4774_s1 = sld [smem:[#allocation39_spill]]  ;;  %s476_s3 = scalar_lea.vmem [#allocation9], %s4237_s12 }
  0x9e   : > { %s484_s13 = sshll.u32 %s476_s3, 4  ;;  %s4255_s25 = scalar_lea.sflag [#allocation10], %s472_s2  ;;  %s4253_s13 = int_to_ptr.vmem [resolvable:$true] %s484_s13 }
  0x9f   : > { %p4261_p12 = pneg %p4241_p3 }
  0xa1   : > { %s4775_s7 = scalar_select %p4261_p12, 1, 0 }
  0xa3   : > { %s4250_s14 = scalar_lea.hbm %s4774_s1, %s4233_s26  ;;  %s3658_s9 = scalar_lea.hbm %s4774_s1, 256 }
  0xa4   : > { %s3653_s5 = scalar_lea.hbm %s4250_s14, 128  ;;  %p3659_p2 = scmp.lt.u32.totalorder %s4250_s14, %s4774_s1 }
  0xa5   : > { %p3654_p11 = scmp.ne.s32.totalorder %s4250_s14, %s3653_s5  ;;  %p3660_p4 = scmp.lt.u32.totalorder %s3658_s9, %s3653_s5 }
  0xa6   : > { %p3662_p1 = scmp.lt.u32.totalorder %s3653_s5, %s4250_s14 }
  0xa7   : > { %p3656_p13 = pnand %p4261_p12, %p3654_p11  ;;  %p3661_p5 = por %p3660_p4, %p3659_p2 }
  0xa9   : > { %p3657_p0 = pneg %p3656_p13  ;;  %p3663_p10 = por %p3662_p1, %p3661_p5 }
  0xab   : > { %p3664_p9 = pnand %p3663_p10, %p3657_p0 }
  0xad   : > { %3667 = shalt.err (!%p3664_p9)
}
  0xae   : > { %s3668_s2 = scalar_lea.vmem %s4253_s13, 128  ;;  %s3965_s10 = smov [#allocation9]  }
  0xaf   : > { %p3669_p11 = scmp.ne.s32.totalorder %s4253_s13, %s3668_s2  ;;  %s3673_s16 = sshll.u32 %s3965_s10, 4  ;;  %s3674_s16 = int_to_ptr.vmem [resolvable:$false] %s3673_s16 }
  0xb0   : > { %s3675_s24 = scalar_lea.vmem %s3674_s16, 256  ;;  %p3676_p6 = scmp.lt.s32.totalorder %s4253_s13, %s3674_s16 }
  0xb1   : > { %p3671_p13 = pnand %p3669_p11, %p4261_p12  ;;  %p3677_p8 = scmp.lt.s32.totalorder %s3675_s24, %s3668_s2 }
  0xb3   : > { %p3672_p7 = pneg %p3671_p13  ;;  %p3678_p2 = por %p3677_p8, %p3676_p6 }
  0xb5   : > { %p3679_p4 = pnand %p3678_p2, %p3672_p7 }
  0xb7   : > { %3682 = shalt.err (!%p3679_p4)
}
  0xb8   : > { %3424 = dma.hbm_to_vmem [thread:$0]  (!%p4241_p3), %s4250_s14, 128, %s4253_s13, %s4255_s25  }
  0xb9   : > { %s3966_s5 = smov [#allocation14]   ;;  %s4776_s4 = sld [smem:[#allocation42_spill]] }
  0xba   : > { %s363_s9 = sshll.u32 %s3966_s5, 4  ;;  %p4777_p8 = scmp.ne.s32.totalorder %s4761_s11, 0  ;;  %s364_s9 = int_to_ptr.vmem [resolvable:$true] %s363_s9 }
  0xbf   : > { %s3683_s10 = scalar_lea.hbm %s4776_s4, 64 }
  0xc0   : > { %p3684_p6 = scmp.ne.s32.totalorder %s4776_s4, %s3683_s10  ;;  %p3690_p10 = scmp.lt.u32.totalorder %s3683_s10, %s4776_s4 }
  0xc2   : > { %p3686_p7 = pnand %p3684_p6, %p4777_p8 }
  0xc4   : > { %p3687_p9 = pneg %p3686_p7 }
  0xc6   : > { %p3692_p0 = pnand %p3690_p10, %p3687_p9 }
  0xc8   : > { %3695 = shalt.err (!%p3692_p0)
}
  0xc9   : > { %s3696_s13 = scalar_lea.vmem %s364_s9, 64  ;;  %p3704_p13 = scmp.lt.s32.totalorder %s364_s9, %s364_s9 }
  0xca   : > { %p3697_p5 = scmp.ne.s32.totalorder %s364_s9, %s3696_s13  ;;  %p3705_p2 = scmp.lt.s32.totalorder %s3696_s13, %s3696_s13 }
  0xcc   : > { %p3699_p1 = pnand %p3697_p5, %p4777_p8  ;;  %p3706_p4 = por %p3705_p2, %p3704_p13 }
  0xce   : > { %p3700_p11 = pneg %p3699_p1 }
  0xd0   : > { %p3707_p3 = pnand %p3706_p4, %p3700_p11 }
  0xd2   : > { %3710 = shalt.err (!%p3707_p3)
}
  0xd3   : > { %s3967_s1 = smov 16   ;;  %s3968_s21 = smov 1  }
  0xd4   : > { %p4778_p6 = scmp.ne.s32.totalorder %s4759_s27, 0  ;;  %s3969_s3 = smov [#allocation17]  }
  0xd5   : > { %s389_s10 = sshll.u32 %s3969_s3, 4  ;;  %s3970_s16 = smov [#allocation20]   ;;  %s390_s10 = int_to_ptr.vmem [resolvable:$true] %s389_s10 }
  0xd6   : > { %3399 = dma.hbm_to_vmem [thread:$0]  (!%p4778_p6), %s4776_s4, 64, %s364_s9, [#allocation13], %s3967_s1, %s3967_s1, %s3968_s21  }
  0xd7   : > { %s415_s2 = sshll.u32 %s3970_s16, 4  ;;  %s4779_s6 = sld [smem:[#allocation44_spill]]  ;;  %s4306_s2 = int_to_ptr.vmem [resolvable:$true] %s415_s2 }
  0xdd   : > { %s3711_s28 = scalar_lea.hbm %s4779_s6, 64 }
  0xde   : > { %p3712_p3 = scmp.ne.s32.totalorder %s4779_s6, %s3711_s28  ;;  %p3718_p10 = scmp.lt.u32.totalorder %s3711_s28, %s4779_s6 }
  0xe0   : > { %p3714_p7 = pnand %p3712_p3, %p4777_p8 }
  0xe2   : > { %p3715_p9 = pneg %p3714_p7 }
  0xe4   : > { %p3720_p0 = pnand %p3718_p10, %p3715_p9 }
  0xe6   : > { %3723 = shalt.err (!%p3720_p0)
}
  0xe7   : > { %s3724_s5 = scalar_lea.vmem %s390_s10, 64  ;;  %p3732_p13 = scmp.lt.s32.totalorder %s390_s10, %s390_s10 }
  0xe8   : > { %p3725_p5 = scmp.ne.s32.totalorder %s390_s10, %s3724_s5  ;;  %p3733_p2 = scmp.lt.s32.totalorder %s3724_s5, %s3724_s5 }
  0xea   : > { %p3727_p1 = pnand %p3725_p5, %p4777_p8  ;;  %p3734_p4 = por %p3733_p2, %p3732_p13 }
  0xec   : > { %p3728_p11 = pneg %p3727_p1 }
  0xee   : > { %p3735_p12 = pnand %p3734_p4, %p3728_p11 }
  0xf0   : > { %3738 = shalt.err (!%p3735_p12)
}
  0xf1   : > { %3405 = dma.hbm_to_vmem [thread:$0]  (!%p4778_p6), %s4779_s6, 64, %s390_s10, [#allocation16], %s3967_s1, %s3967_s1, %s3968_s21  }
  0xf2   : > { %s3739_s16 = scalar_lea.hbm %s4718_s8, 64 }
  0xf3   : > { %p3740_p3 = scmp.ne.s32.totalorder %s4718_s8, %s3739_s16  ;;  %p3746_p9 = scmp.lt.u32.totalorder %s3739_s16, %s4718_s8 }
  0xf5   : > { %p3742_p12 = pnand %p3740_p3, %p4777_p8 }
  0xf7   : > { %p3743_p7 = pneg %p3742_p12 }
  0xf9   : > { %p3748_p10 = pnand %p3746_p9, %p3743_p7 }
  0xfb   : > { %3751 = shalt.err (!%p3748_p10)
}
  0xfc   : > { %s3752_s10 = scalar_lea.vmem %s4306_s2, 64  ;;  %p3760_p11 = scmp.lt.s32.totalorder %s4306_s2, %s4306_s2 }
  0xfd   : > { %p3753_p0 = scmp.ne.s32.totalorder %s4306_s2, %s3752_s10  ;;  %p3761_p13 = scmp.lt.s32.totalorder %s3752_s10, %s3752_s10 }
  0xff   : > { %p3755_p5 = pnand %p3753_p0, %p4777_p8  ;;  %p3762_p2 = por %p3761_p13, %p3760_p11 }
 0x101   : > { %p3756_p1 = pneg %p3755_p5 }
 0x103   : > { %p3763_p4 = pnand %p3762_p2, %p3756_p1 }
 0x105   : > { %3766 = shalt.err (!%p3763_p4)
}
 0x106   : > { %3411 = dma.hbm_to_vmem [thread:$0]  (!%p4778_p6), %s4718_s8, 64, %s4306_s2, [#allocation19], %s3967_s1, %s3967_s1, %s3968_s21  }
 0x107   : > { %s3971_s28 = smov [#allocation23]   ;;  %s4359_s24 = scalar_lea.hbm %s4710_s0, %s4233_s26 }
 0x108   : > { %s442_s30 = sshll.u32 %s3971_s28, 4  ;;  %s4780_s9 = sld [smem:[#allocation47_spill]]  ;;  %s443_s30 = int_to_ptr.vmem [resolvable:$true] %s442_s30 }
 0x10e   : > { %s3767_s10 = scalar_lea.hbm %s4780_s9, 16 }
 0x10f   : > { %p3768_p3 = scmp.ne.s32.totalorder %s4780_s9, %s3767_s10  ;;  %p3774_p9 = scmp.lt.u32.totalorder %s3767_s10, %s4780_s9 }
 0x111   : > { %p3770_p12 = pnand %p3768_p3, %p4777_p8 }
 0x113   : > { %p3771_p7 = pneg %p3770_p12 }
 0x115   : > { %p3776_p10 = pnand %p3774_p9, %p3771_p7 }
 0x117   : > { %3779 = shalt.err (!%p3776_p10)
}
 0x118   : > { %s3780_s2 = scalar_lea.vmem %s443_s30, 16  ;;  %s3787_s5 = scalar_lea.vmem %s443_s30, 32 }
 0x119   : > { %p3781_p0 = scmp.ne.s32.totalorder %s443_s30, %s3780_s2  ;;  %p3788_p11 = scmp.lt.s32.totalorder %s443_s30, %s443_s30 }
 0x11a   : > { %p3789_p13 = scmp.lt.s32.totalorder %s3787_s5, %s3780_s2 }
 0x11b   : > { %p3783_p5 = pnand %p3781_p0, %p4777_p8 }
 0x11c   : > { %p3790_p2 = por %p3789_p13, %p3788_p11 }
 0x11d   : > { %p3784_p1 = pneg %p3783_p5 }
 0x11f   : > { %p3791_p4 = pnand %p3790_p2, %p3784_p1 }
 0x121   : > { %3794 = shalt.err (!%p3791_p4)
}
 0x122   : > { %3417 = dma.hbm_to_vmem [thread:$0]  (!%p4778_p6), %s4780_s9, 16, %s443_s30, [#allocation22]  }
 0x123   : > { %s457_s11 = scalar_lea.vmem [#allocation6], %s4237_s12  ;;  %s4781_s16 = sld [smem:[#allocation40_spill]] }
 0x124   : > { %s465_s22 = sshll.u32 %s457_s11, 4  ;;  %s4782_s13 = sand.u32 1, %s3945_s19   ;;  %s4380_s22 = int_to_ptr.vmem [resolvable:$true] %s465_s22 }
 0x125   : > { %s454_s14 = scalar_lea.sflag [#allocation7], %s4782_s13  ;;  %s3795_s10 = scalar_lea.hbm %s4359_s24, 128 }
 0x126   : > { %p3796_p8 = scmp.ne.s32.totalorder %s4359_s24, %s3795_s10  ;;  %p4783_p3 = scmp.ne.s32.totalorder %s4775_s7, 0 }
 0x127   : > { %s3800_s30 = scalar_lea.hbm %s4710_s0, 256  ;;  %p3801_p6 = scmp.lt.u32.totalorder %s4359_s24, %s4710_s0 }
 0x128   : > { %p3798_p12 = pnand %p3796_p8, %p4783_p3  ;;  %p3802_p9 = scmp.lt.u32.totalorder %s3800_s30, %s3795_s10 }
 0x129   : > { %s4386_s27 = scalar_lea.hbm %s4781_s16, %s4233_s26  ;;  %p3804_p0 = scmp.lt.u32.totalorder %s3795_s10, %s4359_s24 }
 0x12a   : > { %p3799_p7 = pneg %p3798_p12  ;;  %p3803_p10 = por %p3802_p9, %p3801_p6 }
 0x12c   : > { %p3805_p5 = por %p3804_p0, %p3803_p10 }
 0x12e   : > { %p3806_p1 = pnand %p3805_p5, %p3799_p7 }
 0x130   : > { %3809 = shalt.err (!%p3806_p1)
}
 0x131   : > { %s3810_s26 = scalar_lea.vmem %s4380_s22, 128  ;;  %s3972_s4 = smov [#allocation6]  }
 0x132   : > { %p3811_p11 = scmp.ne.s32.totalorder %s4380_s22, %s3810_s26  ;;  %s3815_s6 = sshll.u32 %s3972_s4, 4  ;;  %s3816_s6 = int_to_ptr.vmem [resolvable:$false] %s3815_s6 }
 0x133   : > { %s3817_s11 = scalar_lea.vmem %s3816_s6, 256  ;;  %p3818_p4 = scmp.lt.s32.totalorder %s4380_s22, %s3816_s6 }
 0x134   : > { %p3813_p13 = pnand %p3811_p11, %p4783_p3  ;;  %p3819_p8 = scmp.lt.s32.totalorder %s3817_s11, %s3810_s26 }
 0x136   : > { %p3814_p2 = pneg %p3813_p13  ;;  %p3820_p12 = por %p3819_p8, %p3818_p4 }
 0x138   : > { %p3821_p6 = pnand %p3820_p12, %p3814_p2 }
 0x13a   : > { %3824 = shalt.err (!%p3821_p6)
}
 0x13b   : > { %p4784_p7 = scmp.ne.s32.totalorder %s4773_s29, 0  ;;  %s495_s28 = scalar_lea.vmem [#allocation11], %s4237_s12 }
 0x13c   : > { %s503_s3 = sshll.u32 %s495_s28, 4  ;;  %s3825_s13 = scalar_lea.hbm %s4386_s27, 128  ;;  %s504_s3 = int_to_ptr.vmem [resolvable:$true] %s503_s3 }
 0x13d   : > { %3421 = dma.hbm_to_vmem [thread:$0]  (!%p4784_p7), %s4359_s24, 128, %s4380_s22, %s454_s14  }
 0x13e   : > { %p3826_p9 = scmp.ne.s32.totalorder %s4386_s27, %s3825_s13  ;;  %s3830_s21 = scalar_lea.hbm %s4781_s16, 256 }
 0x13f   : > { %p3831_p5 = scmp.lt.u32.totalorder %s4386_s27, %s4781_s16  ;;  %p3832_p1 = scmp.lt.u32.totalorder %s3830_s21, %s3825_s13 }
 0x140   : > { %p3828_p10 = pnand %p3826_p9, %p4783_p3  ;;  %p3834_p13 = scmp.lt.u32.totalorder %s3825_s13, %s4386_s27 }
 0x141   : > { %p3833_p11 = por %p3832_p1, %p3831_p5 }
 0x142   : > { %p3829_p0 = pneg %p3828_p10 }
 0x143   : > { %p3835_p2 = por %p3834_p13, %p3833_p11 }
 0x145   : > { %p3836_p4 = pnand %p3835_p2, %p3829_p0 }
 0x147   : > { %3839 = shalt.err (!%p3836_p4)
}
 0x148   : > { %s3840_s12 = scalar_lea.vmem %s504_s3, 128  ;;  %s3973_s24 = smov [#allocation11]  }
 0x149   : > { %p3841_p8 = scmp.ne.s32.totalorder %s504_s3, %s3840_s12  ;;  %s3845_s22 = sshll.u32 %s3973_s24, 4  ;;  %s3846_s22 = int_to_ptr.vmem [resolvable:$false] %s3845_s22 }
 0x14a   : > { %s3847_s14 = scalar_lea.vmem %s3846_s22, 256  ;;  %p3848_p9 = scmp.lt.s32.totalorder %s504_s3, %s3846_s22 }
 0x14b   : > { %p3843_p12 = pnand %p3841_p8, %p4783_p3  ;;  %p3849_p10 = scmp.lt.s32.totalorder %s3847_s14, %s3840_s12 }
 0x14d   : > { %p3844_p6 = pneg %p3843_p12  ;;  %p3850_p7 = por %p3849_p10, %p3848_p9 }
 0x14f   : > { %p3851_p1 = pnand %p3850_p7, %p3844_p6 }
 0x151   : > { %3854 = shalt.err (!%p3851_p1)
}
 0x152   : > { %p4785_p5 = scmp.ne.s32.totalorder %s4773_s29, 0  ;;  %s4786_s5 = sld [smem:[#allocation35_spill]] }
 0x154   : > { %3427 = dma.hbm_to_vmem [thread:$0]  (!%p4785_p5), %s4386_s27, 128, %s504_s3, %s4255_s25  }
 0x158   : > { %p4787_p0 = scmp.ne.s32.totalorder %s4786_s5, 0 }
 0x159   : > { %s4433_s7 = sand.u32 (!%p4787_p0), 1, %s3941_s18   ;;  %p4788_p3 = scmp.ne.s32.totalorder (!%p4787_p0), %s4768_s15, 0 }
 0x15a   : > { %512 = sbr.rel (%p4787_p0) target bundleno = 1651 (0x673), region = 64  ;;  %s4436_s26 = sshll.u32 (!%p4787_p0), %s4433_s7, 3 }
 0x15b   : > { %s515_s4 = scalar_lea.sflag (!%p4787_p0), [#allocation7], %s4433_s7  ;;  %s518_s6 = scalar_lea.vmem (!%p4787_p0), [#allocation6], %s4436_s26 }
 0x161   : > { %3908 = dma.done.wait (%p4788_p3), %s515_s4, 128  }
 0x162   : > { %3910 = vsyncadd (%p4788_p3), %s515_s4, 4294967168  ;;  %s523_s29 = sand.u32 1, %s4071_s23   ;;  %s527_s27 = scalar_lea.vmem [#allocation9], %s4436_s26 }
 0x163   : > { %s524_s25 = scalar_lea.sflag [#allocation10], %s523_s29 }
 0x164   : > { %3912 = dma.done.wait (%p4788_p3), %s524_s25, 256  }
 0x165   : > { %3914 = vsyncadd (%p4788_p3), %s524_s25, 4294967040  ;;  %s536_s11 = scalar_lea.vmem [#allocation11], %s4436_s26  ;;  %p4789_p7 = scmp.eq.s32.totalorder %s4071_s23, 0 }
 0x167   : > { %3916 = dma.done.wait (%p4789_p7), [#allocation13], 2112   ;;  %p4790_p11 = pmov %p4789_p7 }
 0x168   : > { %p4791_p13 = pmov %p4789_p7 }
 0x169   : > { %3918 = vsyncadd (%p4790_p11), [#allocation13], 4294965184 }
 0x16a   : > { %3920 = dma.done.wait (%p4791_p13), [#allocation16], 2112   ;;  %p4792_p2 = pmov %p4789_p7 }
 0x16c   : > { %3922 = vsyncadd (%p4792_p2), [#allocation16], 4294965184  ;;  %p4793_p4 = pmov %p4792_p2 }
 0x16d   : > { %p4794_p8 = pmov %p4792_p2 }
 0x16e   : > { %3924 = dma.done.wait (%p4793_p4), [#allocation19], 2112  }
 0x16f   : > { %3926 = vsyncadd (%p4794_p8), [#allocation19], 4294965184  ;;  %p4795_p12 = pmov %p4792_p2 }
 0x170   : > { %p4796_p6 = pmov %p4792_p2 }
 0x171   : > { %3928 = dma.done.wait (%p4795_p12), [#allocation22], 528  }
 0x172   : > { %3930 = vsyncadd (%p4796_p6), [#allocation22], 4294966768  ;;  %v3974_v0 = vmov 0.0|0.0   ;;  %vm3975_vm0 = vmmov 0   ;;  %v3976_v1 = vmov 0.0   ;;  %v622_v2 = vld [vmem:[#allocation12] sm:$0xff] }
 0x173   : > { %3281 = vmatprep.subr.bf16.mxu0 %v3974_v0  ;;  %3287 = vmatprep.subr.bf16.mxu1 %v3974_v0  ;;  %v623_v3 = vld [vmem:[#allocation12 + $0x8] sm:$0xff]  ;;  %v626_v4 = vld [vmem:[#allocation12 + $0x20] sm:$0xff]  ;;  %v624_v7 = vld [vmem:[#allocation12 + $0x10] sm:$0xff]  ;;  %vm666_vm1 = vcmask 261120   ;;  %vm950_vm2 = vcmask 64512   ;;  %vm955_vm3 = vcmask 7168  }
 0x174   : > { %3097 = vmatprep.mubr.msk.f32.mxu0 %vm3975_vm0, %v3976_v1  ;;  %3108 = vmatprep.mubr.msk.f32.mxu1 %vm3975_vm0, %v3976_v1  ;;  %v3282_v5 = vpack.c.bf16 %v623_v3, %v622_v2  ;;  %v627_v6 = vld [vmem:[#allocation12 + $0x28] sm:$0xff]  ;;  %v625_v8 = vld [vmem:[#allocation12 + $0x18] sm:$0xff]  ;;  %v628_v10 = vld [vmem:[#allocation12 + $0x30] sm:$0xff]  ;;  %964 = vst.msk [vmem:[#allocation5] sm:$0xff] %vm950_vm2, %v3976_v1  ;;  %s4797_s23 = sld [smem:[#allocation32_spill]]  ;;  %s616_s28 = scalar_lea.vmem [#allocation24], %s4436_s26 }
 0x175   : > { %v3288_v9 = vpack.c.bf16 %v627_v6, %v626_v4  ;;  %v629_v11 = vld [vmem:[#allocation12 + $0x38] sm:$0xff]  ;;  %v3285_v12 = vpack.c.bf16 %v625_v8, %v624_v7  ;;  %v630_v14 = vld [vmem:[#allocation12 + $0x40] sm:$0xff]  ;;  %v631_v15 = vld [vmem:[#allocation12 + $0x48] sm:$0xff]  ;;  %965 = vst.msk [vmem:[#allocation5 + $0x8] sm:$0xff] %vm950_vm2, %v3976_v1  ;;  %s2725_s3 = sshll.u32 %s616_s28, 4  ;;  %s4798_s1 = sld [smem:[#allocation48_spill]]  ;;  %s4662_s3 = int_to_ptr.vmem [resolvable:$true] %s2725_s3 }
 0x176   : > { %3283 = vmatpush3.bf16.msra.mxu0 %v3282_v5  ;;  %v3291_v13 = vpack.c.bf16 %v629_v11, %v628_v10  ;;  %v634_v16 = vld [vmem:[#allocation12 + $0x60] sm:$0xff]  ;;  %v635_v17 = vld [vmem:[#allocation12 + $0x68] sm:$0xff]  ;;  %v621_v18 = vld [vmem:[%s518_s6] sm:$0xff]  ;;  %v3294_v19 = vpack.c.bf16 %v631_v15, %v630_v14  ;;  %966 = vst.msk [vmem:[#allocation5 + $0x10] sm:$0xff] %vm950_vm2, %v3976_v1  ;;  %s2711_s30 = scalar_lea.sflag [#allocation8], %s4433_s7  ;;  %s3855_s2 = scalar_lea.vmem %s4662_s3, 128 }
 0x177   : > { %3289 = vmatpush3.bf16.msra.mxu1 %v3288_v9  ;;  %3284 = vmatprep.subr.bf16.mxu0 %v3974_v0  ;;  %v3300_v20 = vpack.c.bf16 %v635_v17, %v634_v16  ;;  %v632_v21 = vld [vmem:[#allocation12 + $0x50] sm:$0xff]  ;;  %v633_v22 = vld [vmem:[#allocation12 + $0x58] sm:$0xff]  ;;  %v970_v27 = vld [vmem:[#allocation15] sm:$0xff]  ;;  %967 = vst.msk [vmem:[#allocation5 + $0x18] sm:$0xff] %vm950_vm2, %v3976_v1  ;;  %p3856_p9 = scmp.ne.s32.totalorder %s4662_s3, %s3855_s2  ;;  %p4799_p10 = scmp.ne.s32.totalorder %s4769_s20, 0 }
 0x178   : > { %3290 = vmatprep.subr.bf16.mxu1 %v3974_v0  ;;  %v636_v23 = vld [vmem:[#allocation12 + $0x70] sm:$0xff]  ;;  %v637_v24 = vld [vmem:[#allocation12 + $0x78] sm:$0xff]  ;;  %v3297_v25 = vpack.c.bf16 %v633_v22, %v632_v21  ;;  %v974_v29 = vld [vmem:[#allocation15 + $0x20] sm:$0xff]  ;;  %960 = vst.msk [vmem:[#allocation4] sm:$0xff] %vm955_vm3, %v3976_v1  ;;  %s3979_s12 = smov [#allocation24]  }
 0x179   : > { %v3303_v26 = vpack.c.bf16 %v637_v24, %v636_v23  ;;  %v971_v28 = vld [vmem:[#allocation15 + $0x8] sm:$0xff]  ;;  %v972_v33 = vld [vmem:[#allocation15 + $0x10] sm:$0xff]  ;;  %v973_v34 = vld [vmem:[#allocation15 + $0x18] sm:$0xff]  ;;  %961 = vst.msk [vmem:[#allocation4 + $0x8] sm:$0xff] %vm955_vm3, %v3976_v1  ;;  %p3857_p1 = pnand %p3856_p9, %p4799_p10  ;;  %s3859_s24 = sshll.u32 %s3979_s12, 4  ;;  %s3860_s24 = int_to_ptr.vmem [resolvable:$false] %s3859_s24 }
 0x17a   : > { %3286 = vmatpush3.bf16.msra.mxu0 %v3285_v12  ;;  %v975_v30 = vld [vmem:[#allocation15 + $0x28] sm:$0xff]  ;;  %v3306_v31 = vpack.c.bf16 %v971_v28, %v970_v27  ;;  %v976_v35 = vld [vmem:[#allocation15 + $0x30] sm:$0xff]  ;;  %v977_v36 = vld [vmem:[#allocation15 + $0x38] sm:$0xff]  ;;  %v3309_v37 = vpack.c.bf16 %v973_v34, %v972_v33  ;;  %962 = vst.msk [vmem:[#allocation4 + $0x10] sm:$0xff] %vm955_vm3, %v3976_v1  ;;  %s3002_s15 = sshll.u32 %s4797_s23, 7  ;;  %s3861_s22 = scalar_lea.vmem %s3860_s24, 256 }
 0x17b   : > { %3292 = vmatpush3.bf16.msra.mxu1 %v3291_v13  ;;  %3293 = vmatprep.subr.bf16.mxu0 %v3974_v0  ;;  %v3312_v32 = vpack.c.bf16 %v975_v30, %v974_v29  ;;  %v3315_v38 = vpack.c.bf16 %v977_v36, %v976_v35  ;;  %v978_v39 = vld [vmem:[#allocation15 + $0x40] sm:$0xff]  ;;  %v979_v40 = vld [vmem:[#allocation15 + $0x48] sm:$0xff]  ;;  %v980_v46 = vld [vmem:[#allocation15 + $0x50] sm:$0xff]  ;;  %963 = vst.msk [vmem:[#allocation4 + $0x18] sm:$0xff] %vm955_vm3, %v3976_v1  ;;  %s4660_s21 = scalar_lea.hbm %s4798_s1, %s3002_s15  ;;  %p3858_p5 = pneg %p3857_p1 }
 0x17c   : > { %3299 = vmatprep.subr.bf16.mxu1 %v3974_v0  ;;  %v982_v41 = vld [vmem:[#allocation15 + $0x60] sm:$0xff]  ;;  %v983_v42 = vld [vmem:[#allocation15 + $0x68] sm:$0xff]  ;;  %v3318_v44 = vpack.c.bf16 %v979_v40, %v978_v39  ;;  %v981_v47 = vld [vmem:[#allocation15 + $0x58] sm:$0xff]  ;;  %p3862_p0 = scmp.lt.s32.totalorder %s4662_s3, %s3860_s24  ;;  %p3863_p3 = scmp.lt.s32.totalorder %s3861_s22, %s3855_s2 }
 0x17d   : > { %3098 = vmatmul.mubr.msk.f32.vlgmr.msra.gmra.mrb[0].mxu0 %vm666_vm1, %v621_v18  ;;  %v968_v43 = vld [vmem:[%s527_s27] sm:$0xff]  ;;  %v3324_v45 = vpack.c.bf16 %v983_v42, %v982_v41  ;;  %v984_v48 = vld [vmem:[#allocation15 + $0x70] sm:$0xff]  ;;  %v3321_v50 = vpack.c.bf16 %v981_v47, %v980_v46 }
 0x17e   : > { %3109 = vmatmul.mubr.msk.f32.vlgmr.msra.gmra.mrb[0].mxu1 %vm666_vm1, %v621_v18  ;;  %3295 = vmatpush3.bf16.msra.mxu0 %v3294_v19  ;;  %v985_v49 = vld [vmem:[#allocation15 + $0x78] sm:$0xff]  ;;  %v1298_v52 = vld [vmem:[#allocation18] sm:$0xff]  ;;  %v1299_v53 = vld [vmem:[#allocation18 + $0x8] sm:$0xff]  ;;  %p3864_p7 = por %p3863_p3, %p3862_p0 }
 0x17f   : > { %3301 = vmatpush3.bf16.msra.mxu1 %v3300_v20  ;;  %3296 = vmatprep.subr.bf16.mxu0 %v3974_v0  ;;  %v3327_v51 = vpack.c.bf16 %v985_v49, %v984_v48  ;;  %v1302_v54 = vld [vmem:[#allocation18 + $0x20] sm:$0xff]  ;;  %v1303_v55 = vld [vmem:[#allocation18 + $0x28] sm:$0xff]  ;;  %v3330_v56 = vpack.c.bf16 %v1299_v53, %v1298_v52  ;;  %v1300_v58 = vld [vmem:[#allocation18 + $0x10] sm:$0xff] }
 0x180   : > { %3302 = vmatprep.subr.bf16.mxu1 %v3974_v0  ;;  %3119 = vmatprep.mubr.msk.f32.mxu0 %vm3975_vm0, %v3976_v1  ;;  %v3336_v57 = vpack.c.bf16 %v1303_v55, %v1302_v54  ;;  %v1301_v59 = vld [vmem:[#allocation18 + $0x18] sm:$0xff]  ;;  %v1304_v60 = vld [vmem:[#allocation18 + $0x30] sm:$0xff]  ;;  %v1306_v3 = vld [vmem:[#allocation18 + $0x40] sm:$0xff]  ;;  %p3865_p11 = pnand %p3864_p7, %p3858_p5 }
 0x181   : > { %3130 = vmatprep.mubr.msk.f32.mxu1 %vm3975_vm0, %v3976_v1  ;;  %v3333_v61 = vpack.c.bf16 %v1301_v59, %v1300_v58  ;;  %v1305_v62 = vld [vmem:[#allocation18 + $0x38] sm:$0xff]  ;;  %v969_v2 = vld [vmem:[%s536_s11] sm:$0xff]  ;;  %v1310_v6 = vld [vmem:[#allocation18 + $0x60] sm:$0xff] }
 0x182   : > { %3298 = vmatpush3.bf16.msra.mxu0 %v3297_v25  ;;  %v3339_v63 = vpack.c.bf16 %v1305_v62, %v1304_v60  ;;  %v1307_v4 = vld [vmem:[#allocation18 + $0x48] sm:$0xff]  ;;  %v1308_v9 = vld [vmem:[#allocation18 + $0x50] sm:$0xff]  ;;  %v1309_v10 = vld [vmem:[#allocation18 + $0x58] sm:$0xff]  ;;  %v3977_v62 = vmov -inf  }
 0x183   : > { %3304 = vmatpush3.bf16.msra.mxu1 %v3303_v26  ;;  %3305 = vmatprep.subr.bf16.mxu0 %v3974_v0  ;;  %v3342_v5 = vpack.c.bf16 %v1307_v4, %v1306_v3  ;;  %v1311_v7 = vld [vmem:[#allocation18 + $0x68] sm:$0xff]  ;;  %v1312_v11 = vld [vmem:[#allocation18 + $0x70] sm:$0xff]  ;;  %v3345_v12 = vpack.c.bf16 %v1309_v10, %v1308_v9  ;;  %v1313_v13 = vld [vmem:[#allocation18 + $0x78] sm:$0xff]  ;;  %956 = vst.msk [vmem:[#allocation3] sm:$0xff] %vm955_vm3, %v3977_v62 }
 0x184   : > { %3311 = vmatprep.subr.bf16.mxu1 %v3974_v0  ;;  %v3348_v8 = vpack.c.bf16 %v1311_v7, %v1310_v6  ;;  %v3351_v14 = vpack.c.bf16 %v1313_v13, %v1312_v11  ;;  %v2961_v15 = vld [vmem:[#allocation14 + $0x1] ss:$0 sm:$0xff]  ;;  %v2962_v22 = vld [vmem:[#allocation14 + $0x2] ss:$0 sm:$0xff]  ;;  %v2963_v23 = vld [vmem:[#allocation14 + $0x3] ss:$0 sm:$0xff] }
 0x185   : > { %3120 = vmatmul.mubr.msk.f32.vlgmr.msra.gmra.mrb[2].mxu0 %vm666_vm1, %v621_v18  ;;  %v2968_v30 = vld [vmem:[#allocation17] ss:$0 sm:$0xff]  ;;  %v2970_v40 = vld [vmem:[#allocation17 + $0x2] ss:$0 sm:$0xff]  ;;  %v2971_v41 = vld [vmem:[#allocation17 + $0x3] ss:$0 sm:$0xff] }
 0x186   : > { %3131 = vmatmul.mubr.msk.f32.vlgmr.msra.gmra.mrb[2].mxu1 %vm666_vm1, %v621_v18  ;;  %3307 = vmatpush3.bf16.msra.mxu0 %v3306_v31  ;;  %v2969_v31 = vld [vmem:[#allocation17 + $0x1] ss:$0 sm:$0xff]  ;;  %957 = vst.msk [vmem:[#allocation3 + $0x8] sm:$0xff] %vm955_vm3, %v3977_v62  ;;  %958 = vst.msk [vmem:[#allocation3 + $0x10] sm:$0xff] %vm955_vm3, %v3977_v62  ;;  %v3978_v13 = vmov 0  }
 0x187   : > { %3313 = vmatpush3.bf16.msra.mxu1 %v3312_v32  ;;  %3308 = vmatprep.subr.bf16.mxu0 %v3974_v0  ;;  %959 = vst.msk [vmem:[#allocation3 + $0x18] sm:$0xff] %vm955_vm3, %v3977_v62 }
 0x188   : > { %3314 = vmatprep.subr.bf16.mxu1 %v3974_v0  ;;  %3141 = vmatprep.mubr.msk.f32.mxu0 %vm3975_vm0, %v3976_v1 }
 0x189   : > { %3152 = vmatprep.mubr.msk.f32.mxu1 %vm3975_vm0, %v3976_v1  ;;  %3515 = vset.pattern.permute.xlu0 %v3978_v13 }
 0x18a   : > { %3310 = vmatpush3.bf16.msra.mxu0 %v3309_v37  ;;  %3516 = vset.pattern.permute.xlu1 %v3978_v13 }
 0x18b   : > { %3316 = vmatpush3.bf16.msra.mxu1 %v3315_v38  ;;  %3317 = vmatprep.subr.bf16.mxu0 %v3974_v0 }
 0x18c   : > { %3323 = vmatprep.subr.bf16.mxu1 %v3974_v0 }
 0x18d   : > { %3142 = vmatmul.mubr.msk.f32.vlgmr.msra.gmra.mrb[4].mxu0 %vm666_vm1, %v968_v43 }
 0x18e   : > { %3153 = vmatmul.mubr.msk.f32.vlgmr.msra.gmra.mrb[4].mxu1 %vm666_vm1, %v968_v43  ;;  %3319 = vmatpush3.bf16.msra.mxu0 %v3318_v44 }
 0x18f   : > { %3325 = vmatpush3.bf16.msra.mxu1 %v3324_v45  ;;  %3320 = vmatprep.subr.bf16.mxu0 %v3974_v0 }
 0x190   : > { %3326 = vmatprep.subr.bf16.mxu1 %v3974_v0  ;;  %3163 = vmatprep.mubr.msk.f32.mxu0 %vm3975_vm0, %v3976_v1 }
 0x191   : > { %3174 = vmatprep.mubr.msk.f32.mxu1 %vm3975_vm0, %v3976_v1 }
 0x192   : > { %3322 = vmatpush3.bf16.msra.mxu0 %v3321_v50  ;;  %v2976_v50 = vld [vmem:[#allocation20] ss:$0 sm:$0xff] }
 0x193   : > { %3328 = vmatpush3.bf16.msra.mxu1 %v3327_v51  ;;  %3329 = vmatprep.subr.bf16.mxu0 %v3974_v0  ;;  %v2977_v51 = vld [vmem:[#allocation20 + $0x1] ss:$0 sm:$0xff] }
 0x194   : > { %3335 = vmatprep.subr.bf16.mxu1 %v3974_v0 }
 0x195   : > { %3164 = vmatmul.mubr.msk.f32.vlgmr.msra.gmra.mrb[6].mxu0 %vm666_vm1, %v968_v43 }
 0x196   : > { %3175 = vmatmul.mubr.msk.f32.vlgmr.msra.gmra.mrb[6].mxu1 %vm666_vm1, %v968_v43  ;;  %3331 = vmatpush3.bf16.msra.mxu0 %v3330_v56 }
 0x197   : > { %3337 = vmatpush3.bf16.msra.mxu1 %v3336_v57  ;;  %3332 = vmatprep.subr.bf16.mxu0 %v3974_v0 }
 0x198   : > { %3338 = vmatprep.subr.bf16.mxu1 %v3974_v0  ;;  %3185 = vmatprep.mubr.msk.f32.mxu0 %vm3975_vm0, %v3976_v1 }
 0x199   : > { %3196 = vmatprep.mubr.msk.f32.mxu1 %vm3975_vm0, %v3976_v1 }
 0x19a   : > { %3334 = vmatpush3.bf16.msra.mxu0 %v3333_v61 }
 0x19b   : > { %3340 = vmatpush3.bf16.msra.mxu1 %v3339_v63  ;;  %3341 = vmatprep.subr.bf16.mxu0 %v3974_v0 }
 0x19c   : > { %3347 = vmatprep.subr.bf16.mxu1 %v3974_v0 }
 0x19d   : > { %3186 = vmatmul.mubr.msk.f32.vlgmr.msra.gmra.mrb[8].mxu0 %vm666_vm1, %v969_v2 }
 0x19e   : > { %3197 = vmatmul.mubr.msk.f32.vlgmr.msra.gmra.mrb[8].mxu1 %vm666_vm1, %v969_v2  ;;  %3343 = vmatpush3.bf16.msra.mxu0 %v3342_v5 }
 0x19f   : > { %3349 = vmatpush3.bf16.msra.mxu1 %v3348_v8  ;;  %3344 = vmatprep.subr.bf16.mxu0 %v3974_v0 }
 0x1a0   : > { %3350 = vmatprep.subr.bf16.mxu1 %v3974_v0  ;;  %3207 = vmatprep.mubr.msk.f32.mxu0 %vm3975_vm0, %v3976_v1  ;;  %v2960_v0 = vld [vmem:[#allocation14] ss:$0 sm:$0xff] }
 0x1a1   : > { %3218 = vmatprep.mubr.msk.f32.mxu1 %vm3975_vm0, %v3976_v1 }
 0x1a2   : > { %3346 = vmatpush3.bf16.msra.mxu0 %v3345_v12 }
 0x1a3   : > { %3352 = vmatpush3.bf16.msra.mxu1 %v3351_v14  ;;  %3221 = vmatprep.subr.mxu0 %v3976_v1  ;;  %v4593_v14 = vld [vmem:[#allocation3] sm:$0xff] }
 0x1a4   : > { %3226 = vmatprep.subr.mxu1 %v3976_v1 }
 0x1a5   : > { %3208 = vmatmul.mubr.msk.f32.vlgmr.msra.gmra.mrb[10].mxu0 %vm666_vm1, %v969_v2 }
 0x1a6   : > { %3219 = vmatmul.mubr.msk.f32.vlgmr.msra.gmra.mrb[10].mxu1 %vm666_vm1, %v969_v2  ;;  %3223 = vmatprep.mubr.msk.f32.mxu0 %vm3975_vm0, %v3976_v1 }
 0x1a7   : > { %3228 = vmatprep.mubr.msk.f32.mxu1 %vm3975_vm0, %v3976_v1 }
 0x250   : > { %v736_v16 = vpop.f32.mrb[0].mxu0 }
 0x251   : > { %v737_v17 = vadd.f32 %v2960_v0, %v736_v16  ;;  %v3099_v18 = vpop.f32.mrb[1].mxu0  ;;  %v806_v19 = vpop.f32.mrb[0].mxu1  ;;  %v1935_v16 = vld [vmem:[#allocation3 + $0x8] sm:$0xff] }
 0x252   : > { %v807_v20 = vadd.f32 %v2961_v15, %v806_v19  ;;  %v3110_v21 = vpop.f32.mrb[1].mxu1 }
 0x253   : > { %951 = vst.msk [vmem:[#allocation2] sm:$0xff] %vm950_vm2, %v737_v17 }
 0x254   : > { %952 = vst.msk [vmem:[#allocation2 + $0x8] sm:$0xff] %vm950_vm2, %v807_v20  ;;  %v4603_v20 = vld [vmem:[#allocation3 + $0x10] sm:$0xff] }
 0x258   : > { %v876_v24 = vpop.f32.mrb[2].mxu0 }
 0x259   : > { %v877_v25 = vadd.f32 %v2962_v22, %v876_v24  ;;  %v3121_v26 = vpop.f32.mrb[3].mxu0  ;;  %v946_v27 = vpop.f32.mrb[2].mxu1  ;;  %v1937_v24 = vld [vmem:[#allocation3 + $0x18] sm:$0xff] }
 0x25a   : > { %v947_v28 = vadd.f32 %v2963_v23, %v946_v27  ;;  %v3132_v29 = vpop.f32.mrb[3].mxu1  ;;  %v1625_v38 = vld [vmem:[#allocation2] sm:$0xff] }
 0x25b   : > { %953 = vst.msk [vmem:[#allocation2 + $0x10] sm:$0xff] %vm950_vm2, %v877_v25  ;;  %v1626_v39 = vld [vmem:[#allocation2 + $0x8] sm:$0xff] }
 0x25c   : > { %954 = vst.msk [vmem:[#allocation2 + $0x18] sm:$0xff] %vm950_vm2, %v947_v28 }
 0x260   : > { %v1084_v32 = vpop.f32.mrb[4].mxu0 }
 0x261   : > { %v1085_v33 = vadd.f32 %v2968_v30, %v1084_v32  ;;  %v1154_v34 = vpop.f32.mrb[4].mxu1  ;;  %v3143_v35 = vpop.f32.mrb[5].mxu0 }
 0x262   : > { %v1155_v36 = vadd.f32 %v2969_v31, %v1154_v34  ;;  %v3154_v37 = vpop.f32.mrb[5].mxu1  ;;  %v1627_v48 = vld [vmem:[#allocation2 + $0x10] sm:$0xff] }
 0x263   : > { %3222 = vmatpush3.xpose.msk.msra.mxu0 %vm950_vm2, %v1085_v33  ;;  %v1628_v49 = vld [vmem:[#allocation2 + $0x18] sm:$0xff] }
 0x264   : > { %3227 = vmatpush3.xpose.msk.msra.mxu1 %vm950_vm2, %v1155_v36  ;;  %3231 = vmatprep.subr.mxu0 %v3976_v1 }
 0x265   : > { %3236 = vmatprep.subr.mxu1 %v3976_v1 }
 0x266   : > { %3224 = vmatmul.mubr.msk.f32.vlgmr.msra.gmra.mrb[12].mxu0 %vm950_vm2, %v1625_v38  ;;  %v2978_v38 = vld [vmem:[#allocation20 + $0x2] ss:$0 sm:$0xff] }
 0x267   : > { %3229 = vmatmul.mubr.msk.f32.vlgmr.msra.gmra.mrb[12].mxu1 %vm950_vm2, %v1626_v39  ;;  %3233 = vmatprep.mubr.msk.f32.mxu0 %vm3975_vm0, %v3976_v1 }
 0x268   : > { %v1224_v42 = vpop.f32.mrb[6].mxu0  ;;  %3238 = vmatprep.mubr.msk.f32.mxu1 %vm3975_vm0, %v3976_v1 }
 0x269   : > { %v1225_v43 = vadd.f32 %v2970_v40, %v1224_v42  ;;  %v1294_v44 = vpop.f32.mrb[6].mxu1  ;;  %v3165_v45 = vpop.f32.mrb[7].mxu0 }
 0x26a   : > { %v1295_v46 = vadd.f32 %v2971_v41, %v1294_v44  ;;  %v3176_v47 = vpop.f32.mrb[7].mxu1  ;;  %v2979_v44 = vld [vmem:[#allocation20 + $0x3] ss:$0 sm:$0xff] }
 0x26b   : > { %3232 = vmatpush3.xpose.msk.msra.mxu0 %vm950_vm2, %v1225_v43 }
 0x26c   : > { %3237 = vmatpush3.xpose.msk.msra.mxu1 %vm950_vm2, %v1295_v46  ;;  %3241 = vmatprep.subr.mxu0 %v3976_v1 }
 0x26d   : > { %3246 = vmatprep.subr.mxu1 %v3976_v1 }
 0x26e   : > { %3234 = vmatmul.mubr.msk.f32.vlgmr.msra.gmra.mrb[14].mxu0 %vm950_vm2, %v1627_v48 }
 0x26f   : > { %3239 = vmatmul.mubr.msk.f32.vlgmr.msra.gmra.mrb[14].mxu1 %vm950_vm2, %v1628_v49  ;;  %3243 = vmatprep.mubr.msk.f32.mxu0 %vm3975_vm0, %v3976_v1 }
 0x270   : > { %3248 = vmatprep.mubr.msk.f32.mxu1 %vm3975_vm0, %v3976_v1  ;;  %v1411_v52 = vpop.f32.mrb[8].mxu0 }
 0x271   : > { %v1412_v53 = vadd.f32 %v2976_v50, %v1411_v52  ;;  %v3187_v54 = vpop.f32.mrb[9].mxu0  ;;  %v1481_v55 = vpop.f32.mrb[8].mxu1 }
 0x272   : > { %v1482_v56 = vadd.f32 %v2977_v51, %v1481_v55  ;;  %v3198_v57 = vpop.f32.mrb[9].mxu1 }
 0x273   : > { %3242 = vmatpush3.msra.mxu0 %v1412_v53 }
 0x274   : > { %3247 = vmatpush3.msra.mxu1 %v1482_v56  ;;  %3251 = vmatprep.subr.mxu0 %v3976_v1 }
 0x275   : > { %3256 = vmatprep.subr.mxu1 %v3976_v1 }
 0x278   : > { %v4573_v58 = vpop.f32.mrb[10].mxu0 }
 0x279   : > { %v3209_v59 = vpop.f32.mrb[11].mxu0  ;;  %v4575_v60 = vpop.f32.mrb[10].mxu1  ;;  %v1552_v42 = vadd.f32 %v2978_v38, %v4573_v58 }
 0x27a   : > { %v3220_v61 = vpop.f32.mrb[11].mxu1  ;;  %v1622_v47 = vadd.f32 %v2979_v44, %v4575_v60 }
 0x27b   : > { %v1998_v61 = vld [vmem:[#allocation4] sm:$0xff] }
 0x339   : > { %v1702_v63 = vpop.f32.mrb[12].mxu0 }
 0x33a   : > { %v1778_v2 = vpop.f32.mrb[12].mxu1  ;;  %v3225_v3 = vpop.f32.mrb[13].mxu0  ;;  %v1938_v4 = vsel %vm950_vm2, %v1702_v63, -inf }
 0x33b   : > { %v3230_v5 = vpop.f32.mrb[13].mxu1  ;;  %1939 = vmax.xlane.f32.xlu0 %v1938_v4  ;;  %v1941_v6 = vsel %vm950_vm2, %v1778_v2, -inf }
 0x33f   : > { %1942 = vmax.xlane.f32.xlu0 %v1941_v6  ;;  %v2000_v6 = vld [vmem:[#allocation4 + $0x10] sm:$0xff] }
 0x341   : > { %v1854_v7 = vpop.f32.mrb[14].mxu0 }
 0x342   : > { %v1930_v8 = vpop.f32.mrb[14].mxu1  ;;  %v3235_v9 = vpop.f32.mrb[15].mxu0  ;;  %v1944_v10 = vsel %vm950_vm2, %v1854_v7, -inf }
 0x343   : > { %v3240_v11 = vpop.f32.mrb[15].mxu1  ;;  %1945 = vmax.xlane.f32.xlu1 %v1944_v10  ;;  %v1947_v12 = vsel %vm950_vm2, %v1930_v8, -inf  ;;  %v2001_v10 = vld [vmem:[#allocation4 + $0x18] sm:$0xff] }
 0x347   : > { %1948 = vmax.xlane.f32.xlu1 %v1947_v12 }
 0x3c8   : > { %v1940_v0 = vpop.xlane.xlu0 %1939 }
 0x3c9   : > { %v4596_v15 = vmax.f32 %v4593_v14, %v1940_v0 }
 0x3cb   : > { %v1954_v17 = vsub.f32 %v4593_v14, %v4596_v15  ;;  %2355 = vst.msk [vmem:[#allocation3] sm:$0xff] %vm955_vm3, %v4596_v15  ;;  %1968 = vperm.xlu0 %3515, %v4596_v15  }
 0x3cc   : > { %v1943_v18 = vpop.xlane.xlu0 %1942 }
 0x3cd   : > { %v1951_v19 = vmax.f32 %v1935_v16, %v1943_v18  ;;  %v1958_v54 = vmul.f32 1.442695, %v1954_v17 }
 0x3cf   : > { %v1955_v21 = vsub.f32 %v1935_v16, %v1951_v19  ;;  %2356 = vst.msk [vmem:[#allocation3 + $0x8] sm:$0xff] %vm955_vm3, %v1951_v19  ;;  %1973 = vperm.xlu1 %3516, %v1951_v19   ;;  %v2398_v19 = vld [vmem:[#allocation21] sm:$0xff] }
 0x3d0   : > { %v1946_v22 = vpop.xlane.xlu1 %1945 }
 0x3d1   : > { %v1952_v23 = vmax.f32 %v4603_v20, %v1946_v22  ;;  %v1960_v52 = vmul.f32 1.442695, %v1955_v21  ;;  %v2399_v21 = vld [vmem:[#allocation21 + $0x8] sm:$0xff] }
 0x3d3   : > { %v1956_v25 = vsub.f32 %v4603_v20, %v1952_v23  ;;  %2357 = vst.msk [vmem:[#allocation3 + $0x10] sm:$0xff] %vm955_vm3, %v1952_v23  ;;  %1978 = vperm.xlu1 %3516, %v1952_v23  }
 0x3d4   : > { %v1949_v26 = vpop.xlane.xlu1 %1948 }
 0x3d5   : > { %v1953_v27 = vmax.f32 %v1937_v24, %v1949_v26  ;;  %v1962_v55 = vmul.f32 1.442695, %v1956_v25 }
 0x3d7   : > { %v1957_v28 = vsub.f32 %v1937_v24, %v1953_v27  ;;  %2358 = vst.msk [vmem:[#allocation3 + $0x18] sm:$0xff] %vm955_vm3, %v1953_v27  ;;  %1983 = vperm.xlu1 %3516, %v1953_v27   ;;  %v2027_v24 = vld [vmem:[#allocation5] sm:$0xff]  ;;  %v2028_v27 = vld [vmem:[#allocation5 + $0x8] sm:$0xff] }
 0x3d9   : > { %v1964_v56 = vmul.f32 1.442695, %v1957_v28 }
 0x44a   : > { %v1969_v29 = vpop.permute.xlu0 %1968 }
 0x44b   : > { %v1986_v30 = vsub.f32 %v1702_v63, %v1969_v29 }
 0x44d   : > { %v1990_v31 = vmul.f32 1.442695, %v1986_v30 }
 0x44e   : > { %v1974_v32 = vpop.permute.xlu1 %1973 }
 0x44f   : > { %3517 = vpow2.f32 %v1990_v31  ;;  %v1987_v33 = vsub.f32 %v1778_v2, %v1974_v32  ;;  %v1999_v2 = vld [vmem:[#allocation4 + $0x8] sm:$0xff] }
 0x451   : > { %v1992_v34 = vmul.f32 1.442695, %v1987_v33 }
 0x452   : > { %v1979_v35 = vpop.permute.xlu1 %1978 }
 0x453   : > { %3519 = vpow2.f32 %v1992_v34  ;;  %v1988_v36 = vsub.f32 %v1854_v7, %v1979_v35  ;;  %v2029_v34 = vld [vmem:[#allocation5 + $0x10] sm:$0xff] }
 0x455   : > { %v1994_v37 = vmul.f32 1.442695, %v1988_v36 }
 0x456   : > { %v1984_v39 = vpop.permute.xlu1 %1983 }
 0x457   : > { %3521 = vpow2.f32 %v1994_v37  ;;  %v1989_v40 = vsub.f32 %v1930_v8, %v1984_v39  ;;  %v2030_v39 = vld [vmem:[#allocation5 + $0x18] sm:$0xff] }
 0x459   : > { %v3518_v41 = vpop.eup %3517  ;;  %v1996_v43 = vmul.f32 1.442695, %v1989_v40 }
 0x45a   : > { %3244 = vmatmul.mubr.msk.f32.vlgmr.msra.gmra.mrb[16].mxu0 %vm950_vm2, %v3518_v41  ;;  %v2006_v45 = vsel %vm950_vm2, %v3518_v41, 0.0 }
 0x45b   : > { %3523 = vpow2.f32 %v1996_v43  ;;  %3252 = vmatpush3.msra.mxu0 %v1552_v42  ;;  %2007 = vadd.xlane.f32.xlu1 %v2006_v45 }
 0x45c   : > { %3253 = vmatprep.mubr.msk.f32.mxu0 %vm3975_vm0, %v3976_v1  ;;  %3261 = vmatprep.subr.mxu0 %v3976_v1  ;;  %3525 = vpow2.f32 %v1960_v52 }
 0x45d   : > { %v3520_v46 = vpop.eup %3519  ;;  %3527 = vpow2.f32 %v1958_v54 }
 0x45e   : > { %3249 = vmatmul.mubr.msk.f32.vlgmr.msra.gmra.mrb[16].mxu1 %vm950_vm2, %v3520_v46  ;;  %v2009_v48 = vsel %vm950_vm2, %v3520_v46, 0.0  ;;  %3529 = vpow2.f32 %v1962_v55  ;;  %v2401_v55 = vld [vmem:[#allocation21 + $0x18] sm:$0xff] }
 0x45f   : > { %3257 = vmatpush3.msra.mxu1 %v1622_v47  ;;  %2010 = vadd.xlane.f32.xlu0 %v2009_v48  ;;  %3531 = vpow2.f32 %v1964_v56 }
 0x460   : > { %3258 = vmatprep.mubr.msk.f32.mxu1 %vm3975_vm0, %v3976_v1  ;;  %3266 = vmatprep.subr.mxu1 %v3976_v1 }
 0x461   : > { %v3522_v49 = vpop.eup %3521 }
 0x462   : > { %3254 = vmatmul.mubr.msk.f32.vlgmr.msra.gmra.mrb[18].mxu0 %vm950_vm2, %v3522_v49  ;;  %v2012_v50 = vsel %vm950_vm2, %v3522_v49, 0.0 }
 0x463   : > { %2013 = vadd.xlane.f32.xlu1 %v2012_v50  ;;  %3263 = vmatprep.mubr.msk.f32.mxu0 %vm3975_vm0, %v3976_v1 }
 0x464   : > { %3262 = vmatpush3.msra.mxu0 %v2398_v19 }
 0x465   : > { %v3524_v51 = vpop.eup %3523  ;;  %3271 = vmatprep.subr.mxu0 %v3976_v1 }
 0x466   : > { %3259 = vmatmul.mubr.msk.f32.vlgmr.msra.gmra.mrb[18].mxu1 %vm950_vm2, %v3524_v51  ;;  %v2015_v53 = vsel %vm950_vm2, %v3524_v51, 0.0  ;;  %v3526_v57 = vpop.eup %3525  ;;  %v2400_v51 = vld [vmem:[#allocation21 + $0x10] sm:$0xff] }
 0x467   : > { %2016 = vadd.xlane.f32.xlu1 %v2015_v53  ;;  %3268 = vmatprep.mubr.msk.f32.mxu1 %vm3975_vm0, %v3976_v1  ;;  %v3528_v58 = vpop.eup %3527  ;;  %v2003_v4 = vmul.f32 %v3526_v57, %v1999_v2 }
 0x468   : > { %v3530_v59 = vpop.eup %3529  ;;  %v2002_v62 = vmul.f32 %v3528_v58, %v1998_v61  ;;  %3267 = vmatpush3.msra.mxu1 %v2399_v21 }
 0x469   : > { %v3532_v60 = vpop.eup %3531  ;;  %v2004_v8 = vmul.f32 %v3530_v59, %v2000_v6  ;;  %3276 = vmatprep.subr.mxu1 %v3976_v1 }
 0x46a   : > { %v2005_v13 = vmul.f32 %v3532_v60, %v2001_v10 }
 0x475   : > { %2038 = vperm.xlu0 %3515, %v3526_v57  }
 0x478   : > { %2033 = vperm.xlu1 %3516, %v3528_v58  }
 0x47c   : > { %2043 = vperm.xlu1 %3516, %v3530_v59  }
 0x480   : > { %2048 = vperm.xlu1 %3516, %v3532_v60  }
 0x4e8   : > { %v2008_v63 = vpop.xlane.xlu1 %2007 }
 0x4e9   : > { %v2018_v3 = vadd.f32 %v2008_v63, %v2002_v62 }
 0x4eb   : > { %2023 = vst.msk [vmem:[#allocation4] sm:$0xff] %vm955_vm3, %v2018_v3 }
 0x4ec   : > { %v2011_v5 = vpop.xlane.xlu0 %2010 }
 0x4ed   : > { %v2019_v7 = vadd.f32 %v2011_v5, %v2003_v4 }
 0x4ef   : > { %2024 = vst.msk [vmem:[#allocation4 + $0x8] sm:$0xff] %vm955_vm3, %v2019_v7 }
 0x4f0   : > { %v2014_v9 = vpop.xlane.xlu1 %2013 }
 0x4f1   : > { %v2020_v11 = vadd.f32 %v2014_v9, %v2004_v8 }
 0x4f2   : > { %v2362_v12 = vld [vmem:[#allocation4] sm:$0xff] }
 0x4f3   : > { %2025 = vst.msk [vmem:[#allocation4 + $0x10] sm:$0xff] %vm955_vm3, %v2020_v11  ;;  %3533 = vrcp.f32 %v2362_v12  ;;  %v3000_v12 = vld [vmem:[#allocation23] ss:$0 sm:$0xff] }
 0x4f4   : > { %v2017_v14 = vpop.xlane.xlu1 %2016  ;;  %v2039_v28 = vpop.permute.xlu0 %2038 }
 0x4f5   : > { %v2021_v0 = vadd.f32 %v2017_v14, %v2005_v13  ;;  %v2052_v33 = vmul.f32 %v2039_v28, %v2028_v27 }
 0x4f6   : > { %v2363_v15 = vld [vmem:[#allocation4 + $0x8] sm:$0xff] }
 0x4f7   : > { %2026 = vst.msk [vmem:[#allocation4 + $0x18] sm:$0xff] %vm955_vm3, %v2021_v0  ;;  %3535 = vrcp.f32 %v2363_v15 }
 0x4f8   : > { %v2034_v25 = vpop.permute.xlu1 %2033 }
 0x4f9   : > { %v2051_v26 = vmul.f32 %v2034_v25, %v2027_v24 }
 0x4fa   : > { %v2364_v16 = vld [vmem:[#allocation4 + $0x10] sm:$0xff] }
 0x4fb   : > { %3537 = vrcp.f32 %v2364_v16 }
 0x4fc   : > { %v2044_v32 = vpop.permute.xlu1 %2043 }
 0x4fd   : > { %v3534_v17 = vpop.eup %3533  ;;  %v2053_v38 = vmul.f32 %v2044_v32, %v2029_v34 }
 0x4fe   : > { %2376 = vperm.xlu1 %3516, %v3534_v17   ;;  %v2365_v18 = vld [vmem:[#allocation4 + $0x18] sm:$0xff] }
 0x4ff   : > { %3539 = vrcp.f32 %v2365_v18 }
 0x500   : > { %v2049_v40 = vpop.permute.xlu1 %2048 }
 0x501   : > { %v3536_v20 = vpop.eup %3535  ;;  %v2054_v44 = vmul.f32 %v2049_v40, %v2030_v39 }
 0x502   : > { %2381 = vperm.xlu0 %3515, %v3536_v20  }
 0x505   : > { %v3538_v22 = vpop.eup %3537 }
 0x506   : > { %2386 = vperm.xlu1 %3516, %v3538_v22  }
 0x509   : > { %v3540_v23 = vpop.eup %3539 }
 0x50a   : > { %2391 = vperm.xlu0 %3515, %v3540_v23  }
 0x52d   : > { %v2124_v29 = vpop.f32.mrb[16].mxu0 }
 0x52e   : > { %v2347_v30 = vadd.f32 %v2124_v29, %v2051_v26  ;;  %v3245_v31 = vpop.f32.mrb[17].mxu0 }
 0x530   : > { %2351 = vst.msk [vmem:[#allocation5] sm:$0xff] %vm950_vm2, %v2347_v30 }
 0x531   : > { %v2197_v35 = vpop.f32.mrb[16].mxu1 }
 0x532   : > { %v2348_v36 = vadd.f32 %v2197_v35, %v2052_v33  ;;  %v3250_v37 = vpop.f32.mrb[17].mxu1 }
 0x534   : > { %2352 = vst.msk [vmem:[#allocation5 + $0x8] sm:$0xff] %vm950_vm2, %v2348_v36 }
 0x535   : > { %v2270_v41 = vpop.f32.mrb[18].mxu0 }
 0x536   : > { %v2349_v42 = vadd.f32 %v2270_v41, %v2053_v38  ;;  %v3255_v43 = vpop.f32.mrb[19].mxu0 }
 0x537   : > { %v2370_v49 = vld [vmem:[#allocation5] sm:$0xff] }
 0x538   : > { %2353 = vst.msk [vmem:[#allocation5 + $0x10] sm:$0xff] %vm950_vm2, %v2349_v42 }
 0x539   : > { %v2343_v45 = vpop.f32.mrb[18].mxu1 }
 0x53a   : > { %v2350_v46 = vadd.f32 %v2343_v45, %v2054_v44  ;;  %v3260_v47 = vpop.f32.mrb[19].mxu1 }
 0x53b   : > { %v2371_v52 = vld [vmem:[#allocation5 + $0x8] sm:$0xff] }
 0x53c   : > { %2354 = vst.msk [vmem:[#allocation5 + $0x18] sm:$0xff] %vm950_vm2, %v2350_v46 }
 0x53f   : > { %v2372_v57 = vld [vmem:[#allocation5 + $0x10] sm:$0xff] }
 0x543   : > { %v2373_v60 = vld [vmem:[#allocation5 + $0x18] sm:$0xff] }
 0x57d   : > { %v2377_v48 = vpop.permute.xlu1 %2376 }
 0x57e   : > { %v2394_v50 = vmul.f32 %v2377_v48, %v2370_v49 }
 0x580   : > { %3264 = vmatmul.mubr.msk.f32.vlgmr.msra.gmra.mrb[20].mxu0 %vm950_vm2, %v2394_v50 }
 0x581   : > { %v2382_v53 = vpop.permute.xlu0 %2381  ;;  %3272 = vmatpush3.msra.mxu0 %v2400_v51  ;;  %3273 = vmatprep.mubr.msk.f32.mxu0 %vm3975_vm0, %v3976_v1 }
 0x582   : > { %v2395_v54 = vmul.f32 %v2382_v53, %v2371_v52 }
 0x584   : > { %3269 = vmatmul.mubr.msk.f32.vlgmr.msra.gmra.mrb[20].mxu1 %vm950_vm2, %v2395_v54 }
 0x585   : > { %v2387_v56 = vpop.permute.xlu1 %2386  ;;  %3277 = vmatpush3.msra.mxu1 %v2401_v55  ;;  %3278 = vmatprep.mubr.msk.f32.mxu1 %vm3975_vm0, %v3976_v1 }
 0x586   : > { %v2396_v58 = vmul.f32 %v2387_v56, %v2372_v57 }
 0x588   : > { %3274 = vmatmul.mubr.msk.f32.vlgmr.msra.gmra.mrb[22].mxu0 %vm950_vm2, %v2396_v58 }
 0x589   : > { %v2392_v59 = vpop.permute.xlu0 %2391 }
 0x58a   : > { %v2397_v61 = vmul.f32 %v2392_v59, %v2373_v60 }
 0x58c   : > { %3279 = vmatmul.mubr.msk.f32.vlgmr.msra.gmra.mrb[22].mxu1 %vm950_vm2, %v2397_v61 }
 0x653   : > { %v2471_v62 = vpop.f32.mrb[20].mxu0 }
 0x654   : > { %v3265_v63 = vpop.f32.mrb[21].mxu0  ;;  %v2694_v3 = vsel %vm666_vm1, %v2471_v62, 0.0 }
 0x657   : > { %v2544_v2 = vpop.f32.mrb[20].mxu1 }
 0x658   : > { %v2695_v4 = vsel %vm666_vm1, %v2544_v2, 0.0  ;;  %v3270_v5 = vpop.f32.mrb[21].mxu1 }
 0x659   : > { %v2696_v6 = vadd.f32 %v2695_v4, %v2694_v3 }
 0x65b   : > { %v2617_v1 = vpop.f32.mrb[22].mxu0 }
 0x65c   : > { %v2697_v7 = vsel %vm666_vm1, %v2617_v1, 0.0  ;;  %v3275_v8 = vpop.f32.mrb[23].mxu0 }
 0x65d   : > { %v2698_v9 = vadd.f32 %v2697_v7, %v2696_v6 }
 0x65f   : > { %v2690_v10 = vpop.f32.mrb[22].mxu1 }
 0x660   : > { %v2699_v11 = vsel %vm666_vm1, %v2690_v10, 0.0  ;;  %v3280_v13 = vpop.f32.mrb[23].mxu1 }
 0x661   : > { %v2700_v14 = vadd.f32 %v2699_v11, %v2698_v9 }
 0x663   : > { %v2708_v0 = vadd.f32 %v3000_v12, %v2700_v14 }
 0x665   : > { %2709 = vst.msk [vmem:[%s616_s28] sm:$0xff] %vm666_vm1, %v2708_v0 }
 0x666   : > { %3868 = shalt.err (!%p3865_p11)
}
 0x667   : > { %s3869_s14 = scalar_lea.hbm %s4660_s21, 128  ;;  %s3873_s26 = scalar_lea.hbm %s4798_s1, 256 }
 0x668   : > { %p3870_p13 = scmp.ne.s32.totalorder %s4660_s21, %s3869_s14  ;;  %p3874_p8 = scmp.lt.u32.totalorder %s4660_s21, %s4798_s1 }
 0x669   : > { %p3875_p12 = scmp.lt.u32.totalorder %s3873_s26, %s3869_s14  ;;  %p3877_p9 = scmp.lt.u32.totalorder %s3869_s14, %s4660_s21 }
 0x66a   : > { %p3871_p2 = pnand %p3870_p13, %p4799_p10 }
 0x66b   : > { %p3876_p6 = por %p3875_p12, %p3874_p8 }
 0x66c   : > { %p3872_p4 = pneg %p3871_p2 }
 0x66d   : > { %p3878_p1 = por %p3877_p9, %p3876_p6 }
 0x66f   : > { %p3879_p5 = pnand %p3878_p1, %p3872_p4 }
 0x671   : > { %3882 = shalt.err (!%p3879_p5)
}
 0x672   : > { %3391 = dma.vmem_to_hbm [thread:$0]  (%p4799_p10), %s4662_s3, 128, %s4660_s21, %s2711_s30  }
 0x673 PF: > { %s4800_s29 = sld [smem:[#allocation38_spill]]  ;;  %s4801_s25 = sld [smem:[#allocation34_spill]] }
 0x674   : > { %s2737_s27 = sand.u32 1, %s3937_s17  }
 0x675   : > { %s2738_s11 = scalar_lea.sflag [#allocation8], %s2737_s27 }
 0x679   : > { %p4802_p0 = scmp.ne.s32.totalorder %s4800_s29, 0  ;;  %p4803_p3 = scmp.ge.s32.totalorder %s4801_s25, 2 }
 0x67b   : > { %p3429_p7 = pnand %p4803_p3, %p4802_p0 }
 0x67d   : > { %3932 = dma.done.wait (!%p3429_p7), %s2738_s11, 128  }
 0x67e   : > { %3934 = vsyncadd (!%p3429_p7), %s2738_s11, 4294967168  ;;  %s34_s22 = sadd.s32 1, %s4801_s25   ;;  %s4804_s20 = sld [smem:[#allocation37_spill]] }
 0x67f   : > { %p31_p11 = scmp.ge.s32.totalorder %s34_s22, 4   ;;  %s4805_s23 = sld [smem:[#allocation33_spill]] }
 0x680   : > { %s4806_s21 = sld [smem:[#allocation36_spill]]  ;;  %s4807_s17 = smov %s3941_s18 }
 0x681   : > { %s4808_s18 = smov %s3945_s19  ;;  %33 = sbr.rel (!%p31_p11) target bundleno = 23 (0x17), region = 173 }
 0x684   : > { %s4809_s19 = smov %s4804_s20 }
 0x685   : > { %s4810_s20 = smov %s4805_s23 }
 0x688   :  { %2743 = vsyncpa [#allocation7], 1 }
 0x689   :  { %2745 = vsyncpa [#allocation7 + $0x1], 1 }
 0x68a   :  { %2746 = vsyncpa [#allocation10], 1 }
 0x68b   :  { %2748 = vsyncpa [#allocation10 + $0x1], 1 }
 0x68c   :  { %2749 = vsyncpa [#allocation13], 1 }
 0x68d   :  { %2750 = vsyncpa [#allocation16], 1 }
 0x68e   :  { %2751 = vsyncpa [#allocation19], 1 }
 0x68f   :  { %2752 = vsyncpa [#allocation22], 1 }
 0x690   :  { %2753 = vsyncpa [#allocation8], 1 }
 0x691   :  { %2755 = vsyncpa [#allocation8 + $0x1], 1 }

</bundles_post_ra>
